<compile_context>
chip_gen: v6e
topology: v6e:2x2x1
jax: 0.10.0
libtpu: 0.0.40
codegen_flags: <defaults>
</compile_context>

<pallas_src>
import functools

import jax
import jax.numpy as jnp
from jax.experimental import pallas as pl
from jax.experimental.pallas import tpu as pltpu

EPS = 1e-5   # nn.LayerNorm default
LANE = 128   # TPU vreg lane width


def _round_up(x, m):
    return (x + m - 1) // m * m


def _pad_to(x, shape):
    return jnp.pad(x, [(0, s - d) for d, s in zip(x.shape, shape)])


def _masked_layer_norm(x, gamma, beta, real_dim):
    """LayerNorm over the first `real_dim` lanes of a zero-padded x.

    Padded lanes of x are maintained exactly zero throughout the fused forward,
    so full-lane sums equal sums over the real channels; gamma/beta are zero in
    the padded lanes, so the output stays zero there too.
    """
    inv = 1.0 / real_dim
    s = jnp.sum(x, axis=-1, keepdims=True)
    ss = jnp.sum(x * x, axis=-1, keepdims=True)
    mu = s * inv
    var = ss * inv - mu * mu                 # == E[(x-mu)^2] over real lanes
    return (x - mu) * jax.lax.rsqrt(var + EPS) * gamma + beta


# ----------------------------------------------------------------------------
# Single fused kernel: embedding -> n_layers x gMLP layer -> classifier.
# Whole graph + all weights resident in VMEM (no grid).
# ----------------------------------------------------------------------------
def gmlp_node_kernel(
    x_ref, a_ref, emb_w_ref, emb_b_ref,
    ln_g_ref, ln_b_ref,
    w1u_ref, b1u_ref, w1v_ref, b1v_ref,
    sg_g_ref, sg_b_ref, w2_ref, b2_ref,
    cls_w_ref, cls_b_ref,
    o_ref,
    *, n_layers, hidden_dim, half_ffn,
):
    a = a_ref[...]                                            # [N, N], loaded once

    # embedding (padded lanes of h stay exactly zero: padded weight rows/cols
    # and bias lanes are zero)
    h = (jnp.dot(x_ref[...], emb_w_ref[...], preferred_element_type=jnp.float32)
         + emb_b_ref[...])                                    # [N, Hp]

    # gMLPBlock — static unrolled layer loop (n_layers is small & static).
    # prob_survival only drops layers during training; inference applies all.
    for l in range(n_layers):
        xn = _masked_layer_norm(h, ln_g_ref[l], ln_b_ref[l], hidden_dim)
        # proj_in pre-split into lane-dense u / v halves (no in-vreg lane slice)
        u = jax.nn.gelu(
            jnp.dot(xn, w1u_ref[l], preferred_element_type=jnp.float32)
            + b1u_ref[l], approximate=True)                   # [N, Gp]
        v = jax.nn.gelu(
            jnp.dot(xn, w1v_ref[l], preferred_element_type=jnp.float32)
            + b1v_ref[l], approximate=True)                   # [N, Gp]
        # spatial gating unit: gate u with graph-aggregated LN(v)
        vn = _masked_layer_norm(v, sg_g_ref[l], sg_b_ref[l], half_ffn)
        vg = jnp.dot(a, vn, preferred_element_type=jnp.float32)
        gated = u * vg
        out = (jnp.dot(gated, w2_ref[l], preferred_element_type=jnp.float32)
               + b2_ref[l])                                   # [N, Hp]
        h = h + out                                           # residual

    # classifier — single lane-dense (padded) unmasked store; narrowed outside
    o_ref[...] = (jnp.dot(h, cls_w_ref[...], preferred_element_type=jnp.float32)
                  + cls_b_ref[...])


# ----------------------------------------------------------------------------
# Parameter init (PyTorch nn.Linear default: U(-1/sqrt(fan_in), 1/sqrt(fan_in)),
# nn.LayerNorm default: weight=1, bias=0) — deterministic, in-script.
# ----------------------------------------------------------------------------
def _linear_init(key, fan_in, fan_out):
    kw, kb = jax.random.split(key)
    bound = 1.0 / (fan_in ** 0.5)
    w = jax.random.uniform(kw, (fan_in, fan_out), jnp.float32, -bound, bound)
    b = jax.random.uniform(kb, (1, fan_out), jnp.float32, -bound, bound)
    return w, b


def init_params(key, num_features, hidden_dim, ffn_dim, num_classes, n_layers):
    assert n_layers >= 2
    keys = jax.random.split(key, n_layers + 2)
    emb_w, emb_b = _linear_init(keys[0], num_features, hidden_dim)
    cls_w, cls_b = _linear_init(keys[1], hidden_dim, num_classes)
    layers = []
    for i in range(n_layers):
        k1, k2 = jax.random.split(keys[2 + i])
        w1, b1 = _linear_init(k1, hidden_dim, ffn_dim)
        w2, b2 = _linear_init(k2, ffn_dim // 2, hidden_dim)
        layers.append(
            dict(
                ln_g=jnp.ones((1, hidden_dim), jnp.float32),
                ln_b=jnp.zeros((1, hidden_dim), jnp.float32),
                w1=w1, b1=b1,
                sg_g=jnp.ones((1, ffn_dim // 2), jnp.float32),
                sg_b=jnp.zeros((1, ffn_dim // 2), jnp.float32),
                w2=w2, b2=b2,
            )
        )
    return dict(emb_w=emb_w, emb_b=emb_b, cls_w=cls_w, cls_b=cls_b, layers=layers)


def pack_params(params, num_features, hidden_dim, ffn_dim, num_classes):
    """Stack per-layer params along a leading [n_layers] axis and zero-pad every
    channel dimension up to a lane-dense multiple of 128."""
    fp = _round_up(num_features, LANE)
    hp = _round_up(hidden_dim, LANE)
    gp = _round_up(ffn_dim // 2, LANE)
    cp = _round_up(num_classes, LANE)
    half = ffn_dim // 2
    layers = params["layers"]
    L = len(layers)

    def stack(name):
        return jnp.stack([lp[name] for lp in layers], axis=0)

    w1 = stack("w1")                         # [L, H, FFN]
    b1 = stack("b1")                         # [L, 1, FFN]
    return dict(
        emb_w=_pad_to(params["emb_w"], (fp, hp)),
        emb_b=_pad_to(params["emb_b"], (1, hp)),
        cls_w=_pad_to(params["cls_w"], (hp, cp)),
        cls_b=_pad_to(params["cls_b"], (1, cp)),
        ln_g=_pad_to(stack("ln_g"), (L, 1, hp)),
        ln_b=_pad_to(stack("ln_b"), (L, 1, hp)),
        # proj_in split into its u / v halves -> two clean lane-dense matmuls
        w1u=_pad_to(w1[:, :, :half], (L, hp, gp)),
        b1u=_pad_to(b1[:, :, :half], (L, 1, gp)),
        w1v=_pad_to(w1[:, :, half:], (L, hp, gp)),
        b1v=_pad_to(b1[:, :, half:], (L, 1, gp)),
        sg_g=_pad_to(stack("sg_g"), (L, 1, gp)),
        sg_b=_pad_to(stack("sg_b"), (L, 1, gp)),
        w2=_pad_to(stack("w2"), (L, gp, hp)),
        b2=_pad_to(stack("b2"), (L, 1, hp)),
    )


# ----------------------------------------------------------------------------
# Glue: GCN-normalized dense adjacency from edge_index, full fused forward.
# ----------------------------------------------------------------------------
def build_norm_adj(edge_index, n):
    src, dst = edge_index
    a = jnp.zeros((n, n), jnp.float32)
    a = a.at[dst, src].set(1.0)
    a = jnp.maximum(a, a.T)                             # undirected
    a = jnp.maximum(a, jnp.eye(n, dtype=jnp.float32))   # self loops
    deg = a.sum(axis=1)
    dinv = jax.lax.rsqrt(deg)
    return a * dinv[:, None] * dinv[None, :]            # D^-1/2 (A+I) D^-1/2


def gmlp_node_forward(packed, x, edge_index, *, hidden_dim, ffn_dim,
                      num_classes, n_layers):
    n, f = x.shape
    a_hat = build_norm_adj(edge_index, n)
    fp = _round_up(f, LANE)
    cp = _round_up(num_classes, LANE)
    x_p = _pad_to(x, (n, fp))

    kernel = functools.partial(
        gmlp_node_kernel,
        n_layers=n_layers, hidden_dim=hidden_dim, half_ffn=ffn_dim // 2)

    n_inputs = 16
    vmem_spec = pl.BlockSpec(memory_space=pltpu.MemorySpace.VMEM)

    out_p = pl.pallas_call(
        kernel,
        out_shape=jax.ShapeDtypeStruct((n, cp), jnp.float32),
        in_specs=[vmem_spec] * n_inputs,   # everything resident in VMEM, no grid
        out_specs=vmem_spec,
    )(
        x_p, a_hat,
        packed["emb_w"], packed["emb_b"],
        packed["ln_g"], packed["ln_b"],
        packed["w1u"], packed["b1u"], packed["w1v"], packed["b1v"],
        packed["sg_g"], packed["sg_b"], packed["w2"], packed["b2"],
        packed["cls_w"], packed["cls_b"],
    )
    return out_p[:, :num_classes]


# ----------------------------------------------------------------------------
# Pure-JAX reference (same math, unpadded) — correctness oracle.
# ----------------------------------------------------------------------------
def _ln_ref(x, g, b):
    mu = jnp.mean(x, axis=-1, keepdims=True)
    var = jnp.mean((x - mu) ** 2, axis=-1, keepdims=True)
    return (x - mu) * jax.lax.rsqrt(var + EPS) * g + b


def gmlp_node_reference(params, x, edge_index, *, ffn_dim):
    n = x.shape[0]
    a_hat = build_norm_adj(edge_index, n)
    half = ffn_dim // 2
    h = x @ params["emb_w"] + params["emb_b"]
    for lp in params["layers"]:
        xn = _ln_ref(h, lp["ln_g"], lp["ln_b"])
        uv = jax.nn.gelu(xn @ lp["w1"] + lp["b1"], approximate=True)
        u, v = uv[:, :half], uv[:, half:]
        vn = _ln_ref(v, lp["sg_g"], lp["sg_b"])
        gated = u * (a_hat @ vn)
        h = h + (gated @ lp["w2"] + lp["b2"])
    return h @ params["cls_w"] + params["cls_b"]


if __name__ == "__main__":
    # Small shapes consistent with the module.
    N_NODES = 64
    NUM_FEATURES = 16
    HIDDEN_DIM = 32
    FFN_DIM = 64
    NUM_CLASSES = 8
    N_LAYERS = 2
    PROB_SURVIVAL = 1.0  # inference: all layers applied

    key = jax.random.PRNGKey(0)
    kx, ke, kp = jax.random.split(key, 3)

    x = jax.random.normal(kx, (N_NODES, NUM_FEATURES), jnp.float32)

    # edge_index: ring graph + random extra edges, shape [2, E]
    src = jnp.arange(N_NODES, dtype=jnp.int32)
    dst = (src + 1) % N_NODES
    extra = jax.random.randint(ke, (2, 2 * N_NODES), 0, N_NODES, dtype=jnp.int32)
    edge_index = jnp.concatenate([jnp.stack([src, dst]), extra], axis=1)

    params = init_params(kp, NUM_FEATURES, HIDDEN_DIM, FFN_DIM, NUM_CLASSES,
                         N_LAYERS)
    packed = pack_params(params, NUM_FEATURES, HIDDEN_DIM, FFN_DIM, NUM_CLASSES)

    fwd = jax.jit(functools.partial(
        gmlp_node_forward,
        hidden_dim=HIDDEN_DIM, ffn_dim=FFN_DIM,
        num_classes=NUM_CLASSES, n_layers=N_LAYERS))

    out = fwd(packed, x, edge_index)
    out = jax.block_until_ready(out)

    assert out.shape == (N_NODES, NUM_CLASSES)
    assert out.dtype == jnp.float32
    assert bool(jnp.all(jnp.isfinite(out)))

    # Correctness vs. pure-JAX reference (same GELU / LN formulation).
    ref = gmlp_node_reference(params, x, edge_index, ffn_dim=FFN_DIM)
    ref = jax.block_until_ready(ref)
    assert bool(jnp.allclose(out, ref, atol=2e-3, rtol=2e-3)), (
        "kernel/reference mismatch: max abs err = "
        f"{float(jnp.max(jnp.abs(out - ref)))}")

    print("KERNEL_OK")
</pallas_src>

<mosaic_0001>
module attributes {stable_mosaic.version = 11 : i64} {
  func.func @gmlp_node_kernel(%arg0: memref<64x128xf32, #tpu.memory_space<vmem>>, %arg1: memref<64x64xf32, #tpu.memory_space<vmem>>, %arg2: memref<128x128xf32, #tpu.memory_space<vmem>>, %arg3: memref<1x128xf32, #tpu.memory_space<vmem>>, %arg4: memref<2x1x128xf32, #tpu.memory_space<vmem>>, %arg5: memref<2x1x128xf32, #tpu.memory_space<vmem>>, %arg6: memref<2x128x128xf32, #tpu.memory_space<vmem>>, %arg7: memref<2x1x128xf32, #tpu.memory_space<vmem>>, %arg8: memref<2x128x128xf32, #tpu.memory_space<vmem>>, %arg9: memref<2x1x128xf32, #tpu.memory_space<vmem>>, %arg10: memref<2x1x128xf32, #tpu.memory_space<vmem>>, %arg11: memref<2x1x128xf32, #tpu.memory_space<vmem>>, %arg12: memref<2x128x128xf32, #tpu.memory_space<vmem>>, %arg13: memref<2x1x128xf32, #tpu.memory_space<vmem>>, %arg14: memref<128x128xf32, #tpu.memory_space<vmem>>, %arg15: memref<1x128xf32, #tpu.memory_space<vmem>>, %arg16: memref<64x128xf32, #tpu.memory_space<vmem>>) attributes {dimension_semantics = [], scalar_prefetch = 0 : i64, scratch_operands = 0 : i64, tpu.core_type = #tpu.core_type<tc>} {
    %c0 = arith.constant 0 : index
    %c0_0 = arith.constant 0 : index
    %0 = vector.load %arg1[%c0, %c0_0] : memref<64x64xf32, #tpu.memory_space<vmem>>, vector<64x64xf32>
    %c0_1 = arith.constant 0 : index
    %c0_2 = arith.constant 0 : index
    %1 = vector.load %arg0[%c0_1, %c0_2] : memref<64x128xf32, #tpu.memory_space<vmem>>, vector<64x128xf32>
    %c0_3 = arith.constant 0 : index
    %c0_4 = arith.constant 0 : index
    %2 = vector.load %arg2[%c0_3, %c0_4] : memref<128x128xf32, #tpu.memory_space<vmem>>, vector<128x128xf32>
    %cst = arith.constant dense<0.000000e+00> : vector<64x128xf32>
    %3 = tpu.matmul %1, %2, %cst {dimension_numbers = #tpu.dot_dimension_numbers<[1], [0], [0], [1], [0, 0, 1, 1], [], []>} : vector<64x128xf32>, vector<128x128xf32>, vector<64x128xf32> -> vector<64x128xf32>
    %c0_5 = arith.constant 0 : index
    %c0_6 = arith.constant 0 : index
    %4 = vector.load %arg3[%c0_5, %c0_6] : memref<1x128xf32, #tpu.memory_space<vmem>>, vector<1x128xf32>
    %5 = vector.broadcast %4 : vector<1x128xf32> to vector<64x128xf32>
    %6 = arith.addf %3, %5 : vector<64x128xf32>
    %c0_7 = arith.constant 0 : index
    %c0_8 = arith.constant 0 : index
    %c0_9 = arith.constant 0 : index
    %7 = vector.load %arg4[%c0_7, %c0_8, %c0_9] : memref<2x1x128xf32, #tpu.memory_space<vmem>>, vector<1x1x128xf32>
    %8 = vector.shape_cast %7 : vector<1x1x128xf32> to vector<1x128xf32>
    %c0_10 = arith.constant 0 : index
    %c0_11 = arith.constant 0 : index
    %c0_12 = arith.constant 0 : index
    %9 = vector.load %arg5[%c0_10, %c0_11, %c0_12] : memref<2x1x128xf32, #tpu.memory_space<vmem>>, vector<1x1x128xf32>
    %10 = vector.shape_cast %9 : vector<1x1x128xf32> to vector<1x128xf32>
    %cst_13 = arith.constant dense<0.000000e+00> : vector<64xf32>
    %11 = vector.multi_reduction <add>, %6, %cst_13 [1] : vector<64x128xf32> to vector<64xf32>
    %12 = vector.shape_cast %11 : vector<64xf32> to vector<64x1xf32>
    %13 = arith.mulf %6, %6 : vector<64x128xf32>
    %cst_14 = arith.constant dense<0.000000e+00> : vector<64xf32>
    %14 = vector.multi_reduction <add>, %13, %cst_14 [1] : vector<64x128xf32> to vector<64xf32>
    %15 = vector.shape_cast %14 : vector<64xf32> to vector<64x1xf32>
    %cst_15 = arith.constant 3.125000e-02 : f32
    %16 = vector.broadcast %cst_15 : f32 to vector<64x1xf32>
    %17 = arith.mulf %12, %16 : vector<64x1xf32>
    %cst_16 = arith.constant 3.125000e-02 : f32
    %18 = vector.broadcast %cst_16 : f32 to vector<64x1xf32>
    %19 = arith.mulf %15, %18 : vector<64x1xf32>
    %20 = arith.mulf %17, %17 : vector<64x1xf32>
    %21 = arith.subf %19, %20 : vector<64x1xf32>
    %22 = vector.broadcast %17 : vector<64x1xf32> to vector<64x128xf32>
    %23 = arith.subf %6, %22 : vector<64x128xf32>
    %cst_17 = arith.constant 9.99999974E-6 : f32
    %24 = vector.broadcast %cst_17 : f32 to vector<64x1xf32>
    %25 = arith.addf %21, %24 : vector<64x1xf32>
    %26 = math.rsqrt %25 : vector<64x1xf32>
    %27 = vector.broadcast %26 : vector<64x1xf32> to vector<64x128xf32>
    %28 = arith.mulf %23, %27 : vector<64x128xf32>
    %29 = vector.broadcast %8 : vector<1x128xf32> to vector<64x128xf32>
    %30 = arith.mulf %28, %29 : vector<64x128xf32>
    %31 = vector.broadcast %10 : vector<1x128xf32> to vector<64x128xf32>
    %32 = arith.addf %30, %31 : vector<64x128xf32>
    %c0_18 = arith.constant 0 : index
    %c0_19 = arith.constant 0 : index
    %c0_20 = arith.constant 0 : index
    %33 = vector.load %arg6[%c0_18, %c0_19, %c0_20] : memref<2x128x128xf32, #tpu.memory_space<vmem>>, vector<1x128x128xf32>
    %34 = vector.shape_cast %33 : vector<1x128x128xf32> to vector<128x128xf32>
    %cst_21 = arith.constant dense<0.000000e+00> : vector<64x128xf32>
    %35 = tpu.matmul %32, %34, %cst_21 {dimension_numbers = #tpu.dot_dimension_numbers<[1], [0], [0], [1], [0, 0, 1, 1], [], []>} : vector<64x128xf32>, vector<128x128xf32>, vector<64x128xf32> -> vector<64x128xf32>
    %c0_22 = arith.constant 0 : index
    %c0_23 = arith.constant 0 : index
    %c0_24 = arith.constant 0 : index
    %36 = vector.load %arg7[%c0_22, %c0_23, %c0_24] : memref<2x1x128xf32, #tpu.memory_space<vmem>>, vector<1x1x128xf32>
    %37 = vector.shape_cast %36 : vector<1x1x128xf32> to vector<1x128xf32>
    %38 = vector.broadcast %37 : vector<1x128xf32> to vector<64x128xf32>
    %39 = arith.addf %35, %38 : vector<64x128xf32>
    %40 = arith.mulf %39, %39 : vector<64x128xf32>
    %41 = arith.mulf %39, %40 : vector<64x128xf32>
    %cst_25 = arith.constant 4.471500e-02 : f32
    %42 = vector.broadcast %cst_25 : f32 to vector<64x128xf32>
    %43 = arith.mulf %42, %41 : vector<64x128xf32>
    %44 = arith.addf %39, %43 : vector<64x128xf32>
    %cst_26 = arith.constant 0.797884583 : f32
    %45 = vector.broadcast %cst_26 : f32 to vector<64x128xf32>
    %46 = arith.mulf %45, %44 : vector<64x128xf32>
    %47 = math.tanh %46 : vector<64x128xf32>
    %cst_27 = arith.constant 1.000000e+00 : f32
    %48 = vector.broadcast %cst_27 : f32 to vector<64x128xf32>
    %49 = arith.addf %48, %47 : vector<64x128xf32>
    %cst_28 = arith.constant 5.000000e-01 : f32
    %50 = vector.broadcast %cst_28 : f32 to vector<64x128xf32>
    %51 = arith.mulf %50, %49 : vector<64x128xf32>
    %52 = arith.mulf %39, %51 : vector<64x128xf32>
    %c0_29 = arith.constant 0 : index
    %c0_30 = arith.constant 0 : index
    %c0_31 = arith.constant 0 : index
    %53 = vector.load %arg8[%c0_29, %c0_30, %c0_31] : memref<2x128x128xf32, #tpu.memory_space<vmem>>, vector<1x128x128xf32>
    %54 = vector.shape_cast %53 : vector<1x128x128xf32> to vector<128x128xf32>
    %cst_32 = arith.constant dense<0.000000e+00> : vector<64x128xf32>
    %55 = tpu.matmul %32, %54, %cst_32 {dimension_numbers = #tpu.dot_dimension_numbers<[1], [0], [0], [1], [0, 0, 1, 1], [], []>} : vector<64x128xf32>, vector<128x128xf32>, vector<64x128xf32> -> vector<64x128xf32>
    %c0_33 = arith.constant 0 : index
    %c0_34 = arith.constant 0 : index
    %c0_35 = arith.constant 0 : index
    %56 = vector.load %arg9[%c0_33, %c0_34, %c0_35] : memref<2x1x128xf32, #tpu.memory_space<vmem>>, vector<1x1x128xf32>
    %57 = vector.shape_cast %56 : vector<1x1x128xf32> to vector<1x128xf32>
    %58 = vector.broadcast %57 : vector<1x128xf32> to vector<64x128xf32>
    %59 = arith.addf %55, %58 : vector<64x128xf32>
    %60 = arith.mulf %59, %59 : vector<64x128xf32>
    %61 = arith.mulf %59, %60 : vector<64x128xf32>
    %cst_36 = arith.constant 4.471500e-02 : f32
    %62 = vector.broadcast %cst_36 : f32 to vector<64x128xf32>
    %63 = arith.mulf %62, %61 : vector<64x128xf32>
    %64 = arith.addf %59, %63 : vector<64x128xf32>
    %cst_37 = arith.constant 0.797884583 : f32
    %65 = vector.broadcast %cst_37 : f32 to vector<64x128xf32>
    %66 = arith.mulf %65, %64 : vector<64x128xf32>
    %67 = math.tanh %66 : vector<64x128xf32>
    %cst_38 = arith.constant 1.000000e+00 : f32
    %68 = vector.broadcast %cst_38 : f32 to vector<64x128xf32>
    %69 = arith.addf %68, %67 : vector<64x128xf32>
    %cst_39 = arith.constant 5.000000e-01 : f32
    %70 = vector.broadcast %cst_39 : f32 to vector<64x128xf32>
    %71 = arith.mulf %70, %69 : vector<64x128xf32>
    %72 = arith.mulf %59, %71 : vector<64x128xf32>
    %c0_40 = arith.constant 0 : index
    %c0_41 = arith.constant 0 : index
    %c0_42 = arith.constant 0 : index
    %73 = vector.load %arg10[%c0_40, %c0_41, %c0_42] : memref<2x1x128xf32, #tpu.memory_space<vmem>>, vector<1x1x128xf32>
    %74 = vector.shape_cast %73 : vector<1x1x128xf32> to vector<1x128xf32>
    %c0_43 = arith.constant 0 : index
    %c0_44 = arith.constant 0 : index
    %c0_45 = arith.constant 0 : index
    %75 = vector.load %arg11[%c0_43, %c0_44, %c0_45] : memref<2x1x128xf32, #tpu.memory_space<vmem>>, vector<1x1x128xf32>
    %76 = vector.shape_cast %75 : vector<1x1x128xf32> to vector<1x128xf32>
    %cst_46 = arith.constant dense<0.000000e+00> : vector<64xf32>
    %77 = vector.multi_reduction <add>, %72, %cst_46 [1] : vector<64x128xf32> to vector<64xf32>
    %78 = vector.shape_cast %77 : vector<64xf32> to vector<64x1xf32>
    %79 = arith.mulf %72, %72 : vector<64x128xf32>
    %cst_47 = arith.constant dense<0.000000e+00> : vector<64xf32>
    %80 = vector.multi_reduction <add>, %79, %cst_47 [1] : vector<64x128xf32> to vector<64xf32>
    %81 = vector.shape_cast %80 : vector<64xf32> to vector<64x1xf32>
    %cst_48 = arith.constant 3.125000e-02 : f32
    %82 = vector.broadcast %cst_48 : f32 to vector<64x1xf32>
    %83 = arith.mulf %78, %82 : vector<64x1xf32>
    %cst_49 = arith.constant 3.125000e-02 : f32
    %84 = vector.broadcast %cst_49 : f32 to vector<64x1xf32>
    %85 = arith.mulf %81, %84 : vector<64x1xf32>
    %86 = arith.mulf %83, %83 : vector<64x1xf32>
    %87 = arith.subf %85, %86 : vector<64x1xf32>
    %88 = vector.broadcast %83 : vector<64x1xf32> to vector<64x128xf32>
    %89 = arith.subf %72, %88 : vector<64x128xf32>
    %cst_50 = arith.constant 9.99999974E-6 : f32
    %90 = vector.broadcast %cst_50 : f32 to vector<64x1xf32>
    %91 = arith.addf %87, %90 : vector<64x1xf32>
    %92 = math.rsqrt %91 : vector<64x1xf32>
    %93 = vector.broadcast %92 : vector<64x1xf32> to vector<64x128xf32>
    %94 = arith.mulf %89, %93 : vector<64x128xf32>
    %95 = vector.broadcast %74 : vector<1x128xf32> to vector<64x128xf32>
    %96 = arith.mulf %94, %95 : vector<64x128xf32>
    %97 = vector.broadcast %76 : vector<1x128xf32> to vector<64x128xf32>
    %98 = arith.addf %96, %97 : vector<64x128xf32>
    %cst_51 = arith.constant dense<0.000000e+00> : vector<64x128xf32>
    %99 = tpu.matmul %0, %98, %cst_51 {dimension_numbers = #tpu.dot_dimension_numbers<[1], [0], [0], [1], [0, 0, 1, 1], [], []>} : vector<64x64xf32>, vector<64x128xf32>, vector<64x128xf32> -> vector<64x128xf32>
    %100 = arith.mulf %52, %99 : vector<64x128xf32>
    %c0_52 = arith.constant 0 : index
    %c0_53 = arith.constant 0 : index
    %c0_54 = arith.constant 0 : index
    %101 = vector.load %arg12[%c0_52, %c0_53, %c0_54] : memref<2x128x128xf32, #tpu.memory_space<vmem>>, vector<1x128x128xf32>
    %102 = vector.shape_cast %101 : vector<1x128x128xf32> to vector<128x128xf32>
    %cst_55 = arith.constant dense<0.000000e+00> : vector<64x128xf32>
    %103 = tpu.matmul %100, %102, %cst_55 {dimension_numbers = #tpu.dot_dimension_numbers<[1], [0], [0], [1], [0, 0, 1, 1], [], []>} : vector<64x128xf32>, vector<128x128xf32>, vector<64x128xf32> -> vector<64x128xf32>
    %c0_56 = arith.constant 0 : index
    %c0_57 = arith.constant 0 : index
    %c0_58 = arith.constant 0 : index
    %104 = vector.load %arg13[%c0_56, %c0_57, %c0_58] : memref<2x1x128xf32, #tpu.memory_space<vmem>>, vector<1x1x128xf32>
    %105 = vector.shape_cast %104 : vector<1x1x128xf32> to vector<1x128xf32>
    %106 = vector.broadcast %105 : vector<1x128xf32> to vector<64x128xf32>
    %107 = arith.addf %103, %106 : vector<64x128xf32>
    %108 = arith.addf %6, %107 : vector<64x128xf32>
    %c1 = arith.constant 1 : index
    %c0_59 = arith.constant 0 : index
    %c0_60 = arith.constant 0 : index
    %109 = vector.load %arg4[%c1, %c0_59, %c0_60] : memref<2x1x128xf32, #tpu.memory_space<vmem>>, vector<1x1x128xf32>
    %110 = vector.shape_cast %109 : vector<1x1x128xf32> to vector<1x128xf32>
    %c1_61 = arith.constant 1 : index
    %c0_62 = arith.constant 0 : index
    %c0_63 = arith.constant 0 : index
    %111 = vector.load %arg5[%c1_61, %c0_62, %c0_63] : memref<2x1x128xf32, #tpu.memory_space<vmem>>, vector<1x1x128xf32>
    %112 = vector.shape_cast %111 : vector<1x1x128xf32> to vector<1x128xf32>
    %cst_64 = arith.constant dense<0.000000e+00> : vector<64xf32>
    %113 = vector.multi_reduction <add>, %108, %cst_64 [1] : vector<64x128xf32> to vector<64xf32>
    %114 = vector.shape_cast %113 : vector<64xf32> to vector<64x1xf32>
    %115 = arith.mulf %108, %108 : vector<64x128xf32>
    %cst_65 = arith.constant dense<0.000000e+00> : vector<64xf32>
    %116 = vector.multi_reduction <add>, %115, %cst_65 [1] : vector<64x128xf32> to vector<64xf32>
    %117 = vector.shape_cast %116 : vector<64xf32> to vector<64x1xf32>
    %cst_66 = arith.constant 3.125000e-02 : f32
    %118 = vector.broadcast %cst_66 : f32 to vector<64x1xf32>
    %119 = arith.mulf %114, %118 : vector<64x1xf32>
    %cst_67 = arith.constant 3.125000e-02 : f32
    %120 = vector.broadcast %cst_67 : f32 to vector<64x1xf32>
    %121 = arith.mulf %117, %120 : vector<64x1xf32>
    %122 = arith.mulf %119, %119 : vector<64x1xf32>
    %123 = arith.subf %121, %122 : vector<64x1xf32>
    %124 = vector.broadcast %119 : vector<64x1xf32> to vector<64x128xf32>
    %125 = arith.subf %108, %124 : vector<64x128xf32>
    %cst_68 = arith.constant 9.99999974E-6 : f32
    %126 = vector.broadcast %cst_68 : f32 to vector<64x1xf32>
    %127 = arith.addf %123, %126 : vector<64x1xf32>
    %128 = math.rsqrt %127 : vector<64x1xf32>
    %129 = vector.broadcast %128 : vector<64x1xf32> to vector<64x128xf32>
    %130 = arith.mulf %125, %129 : vector<64x128xf32>
    %131 = vector.broadcast %110 : vector<1x128xf32> to vector<64x128xf32>
    %132 = arith.mulf %130, %131 : vector<64x128xf32>
    %133 = vector.broadcast %112 : vector<1x128xf32> to vector<64x128xf32>
    %134 = arith.addf %132, %133 : vector<64x128xf32>
    %c1_69 = arith.constant 1 : index
    %c0_70 = arith.constant 0 : index
    %c0_71 = arith.constant 0 : index
    %135 = vector.load %arg6[%c1_69, %c0_70, %c0_71] : memref<2x128x128xf32, #tpu.memory_space<vmem>>, vector<1x128x128xf32>
    %136 = vector.shape_cast %135 : vector<1x128x128xf32> to vector<128x128xf32>
    %cst_72 = arith.constant dense<0.000000e+00> : vector<64x128xf32>
    %137 = tpu.matmul %134, %136, %cst_72 {dimension_numbers = #tpu.dot_dimension_numbers<[1], [0], [0], [1], [0, 0, 1, 1], [], []>} : vector<64x128xf32>, vector<128x128xf32>, vector<64x128xf32> -> vector<64x128xf32>
    %c1_73 = arith.constant 1 : index
    %c0_74 = arith.constant 0 : index
    %c0_75 = arith.constant 0 : index
    %138 = vector.load %arg7[%c1_73, %c0_74, %c0_75] : memref<2x1x128xf32, #tpu.memory_space<vmem>>, vector<1x1x128xf32>
    %139 = vector.shape_cast %138 : vector<1x1x128xf32> to vector<1x128xf32>
    %140 = vector.broadcast %139 : vector<1x128xf32> to vector<64x128xf32>
    %141 = arith.addf %137, %140 : vector<64x128xf32>
    %142 = arith.mulf %141, %141 : vector<64x128xf32>
    %143 = arith.mulf %141, %142 : vector<64x128xf32>
    %cst_76 = arith.constant 4.471500e-02 : f32
    %144 = vector.broadcast %cst_76 : f32 to vector<64x128xf32>
    %145 = arith.mulf %144, %143 : vector<64x128xf32>
    %146 = arith.addf %141, %145 : vector<64x128xf32>
    %cst_77 = arith.constant 0.797884583 : f32
    %147 = vector.broadcast %cst_77 : f32 to vector<64x128xf32>
    %148 = arith.mulf %147, %146 : vector<64x128xf32>
    %149 = math.tanh %148 : vector<64x128xf32>
    %cst_78 = arith.constant 1.000000e+00 : f32
    %150 = vector.broadcast %cst_78 : f32 to vector<64x128xf32>
    %151 = arith.addf %150, %149 : vector<64x128xf32>
    %cst_79 = arith.constant 5.000000e-01 : f32
    %152 = vector.broadcast %cst_79 : f32 to vector<64x128xf32>
    %153 = arith.mulf %152, %151 : vector<64x128xf32>
    %154 = arith.mulf %141, %153 : vector<64x128xf32>
    %c1_80 = arith.constant 1 : index
    %c0_81 = arith.constant 0 : index
    %c0_82 = arith.constant 0 : index
    %155 = vector.load %arg8[%c1_80, %c0_81, %c0_82] : memref<2x128x128xf32, #tpu.memory_space<vmem>>, vector<1x128x128xf32>
    %156 = vector.shape_cast %155 : vector<1x128x128xf32> to vector<128x128xf32>
    %cst_83 = arith.constant dense<0.000000e+00> : vector<64x128xf32>
    %157 = tpu.matmul %134, %156, %cst_83 {dimension_numbers = #tpu.dot_dimension_numbers<[1], [0], [0], [1], [0, 0, 1, 1], [], []>} : vector<64x128xf32>, vector<128x128xf32>, vector<64x128xf32> -> vector<64x128xf32>
    %c1_84 = arith.constant 1 : index
    %c0_85 = arith.constant 0 : index
    %c0_86 = arith.constant 0 : index
    %158 = vector.load %arg9[%c1_84, %c0_85, %c0_86] : memref<2x1x128xf32, #tpu.memory_space<vmem>>, vector<1x1x128xf32>
    %159 = vector.shape_cast %158 : vector<1x1x128xf32> to vector<1x128xf32>
    %160 = vector.broadcast %159 : vector<1x128xf32> to vector<64x128xf32>
    %161 = arith.addf %157, %160 : vector<64x128xf32>
    %162 = arith.mulf %161, %161 : vector<64x128xf32>
    %163 = arith.mulf %161, %162 : vector<64x128xf32>
    %cst_87 = arith.constant 4.471500e-02 : f32
    %164 = vector.broadcast %cst_87 : f32 to vector<64x128xf32>
    %165 = arith.mulf %164, %163 : vector<64x128xf32>
    %166 = arith.addf %161, %165 : vector<64x128xf32>
    %cst_88 = arith.constant 0.797884583 : f32
    %167 = vector.broadcast %cst_88 : f32 to vector<64x128xf32>
    %168 = arith.mulf %167, %166 : vector<64x128xf32>
    %169 = math.tanh %168 : vector<64x128xf32>
    %cst_89 = arith.constant 1.000000e+00 : f32
    %170 = vector.broadcast %cst_89 : f32 to vector<64x128xf32>
    %171 = arith.addf %170, %169 : vector<64x128xf32>
    %cst_90 = arith.constant 5.000000e-01 : f32
    %172 = vector.broadcast %cst_90 : f32 to vector<64x128xf32>
    %173 = arith.mulf %172, %171 : vector<64x128xf32>
    %174 = arith.mulf %161, %173 : vector<64x128xf32>
    %c1_91 = arith.constant 1 : index
    %c0_92 = arith.constant 0 : index
    %c0_93 = arith.constant 0 : index
    %175 = vector.load %arg10[%c1_91, %c0_92, %c0_93] : memref<2x1x128xf32, #tpu.memory_space<vmem>>, vector<1x1x128xf32>
    %176 = vector.shape_cast %175 : vector<1x1x128xf32> to vector<1x128xf32>
    %c1_94 = arith.constant 1 : index
    %c0_95 = arith.constant 0 : index
    %c0_96 = arith.constant 0 : index
    %177 = vector.load %arg11[%c1_94, %c0_95, %c0_96] : memref<2x1x128xf32, #tpu.memory_space<vmem>>, vector<1x1x128xf32>
    %178 = vector.shape_cast %177 : vector<1x1x128xf32> to vector<1x128xf32>
    %cst_97 = arith.constant dense<0.000000e+00> : vector<64xf32>
    %179 = vector.multi_reduction <add>, %174, %cst_97 [1] : vector<64x128xf32> to vector<64xf32>
    %180 = vector.shape_cast %179 : vector<64xf32> to vector<64x1xf32>
    %181 = arith.mulf %174, %174 : vector<64x128xf32>
    %cst_98 = arith.constant dense<0.000000e+00> : vector<64xf32>
    %182 = vector.multi_reduction <add>, %181, %cst_98 [1] : vector<64x128xf32> to vector<64xf32>
    %183 = vector.shape_cast %182 : vector<64xf32> to vector<64x1xf32>
    %cst_99 = arith.constant 3.125000e-02 : f32
    %184 = vector.broadcast %cst_99 : f32 to vector<64x1xf32>
    %185 = arith.mulf %180, %184 : vector<64x1xf32>
    %cst_100 = arith.constant 3.125000e-02 : f32
    %186 = vector.broadcast %cst_100 : f32 to vector<64x1xf32>
    %187 = arith.mulf %183, %186 : vector<64x1xf32>
    %188 = arith.mulf %185, %185 : vector<64x1xf32>
    %189 = arith.subf %187, %188 : vector<64x1xf32>
    %190 = vector.broadcast %185 : vector<64x1xf32> to vector<64x128xf32>
    %191 = arith.subf %174, %190 : vector<64x128xf32>
    %cst_101 = arith.constant 9.99999974E-6 : f32
    %192 = vector.broadcast %cst_101 : f32 to vector<64x1xf32>
    %193 = arith.addf %189, %192 : vector<64x1xf32>
    %194 = math.rsqrt %193 : vector<64x1xf32>
    %195 = vector.broadcast %194 : vector<64x1xf32> to vector<64x128xf32>
    %196 = arith.mulf %191, %195 : vector<64x128xf32>
    %197 = vector.broadcast %176 : vector<1x128xf32> to vector<64x128xf32>
    %198 = arith.mulf %196, %197 : vector<64x128xf32>
    %199 = vector.broadcast %178 : vector<1x128xf32> to vector<64x128xf32>
    %200 = arith.addf %198, %199 : vector<64x128xf32>
    %cst_102 = arith.constant dense<0.000000e+00> : vector<64x128xf32>
    %201 = tpu.matmul %0, %200, %cst_102 {dimension_numbers = #tpu.dot_dimension_numbers<[1], [0], [0], [1], [0, 0, 1, 1], [], []>} : vector<64x64xf32>, vector<64x128xf32>, vector<64x128xf32> -> vector<64x128xf32>
    %202 = arith.mulf %154, %201 : vector<64x128xf32>
    %c1_103 = arith.constant 1 : index
    %c0_104 = arith.constant 0 : index
    %c0_105 = arith.constant 0 : index
    %203 = vector.load %arg12[%c1_103, %c0_104, %c0_105] : memref<2x128x128xf32, #tpu.memory_space<vmem>>, vector<1x128x128xf32>
    %204 = vector.shape_cast %203 : vector<1x128x128xf32> to vector<128x128xf32>
    %cst_106 = arith.constant dense<0.000000e+00> : vector<64x128xf32>
    %205 = tpu.matmul %202, %204, %cst_106 {dimension_numbers = #tpu.dot_dimension_numbers<[1], [0], [0], [1], [0, 0, 1, 1], [], []>} : vector<64x128xf32>, vector<128x128xf32>, vector<64x128xf32> -> vector<64x128xf32>
    %c1_107 = arith.constant 1 : index
    %c0_108 = arith.constant 0 : index
    %c0_109 = arith.constant 0 : index
    %206 = vector.load %arg13[%c1_107, %c0_108, %c0_109] : memref<2x1x128xf32, #tpu.memory_space<vmem>>, vector<1x1x128xf32>
    %207 = vector.shape_cast %206 : vector<1x1x128xf32> to vector<1x128xf32>
    %208 = vector.broadcast %207 : vector<1x128xf32> to vector<64x128xf32>
    %209 = arith.addf %205, %208 : vector<64x128xf32>
    %210 = arith.addf %108, %209 : vector<64x128xf32>
    %c0_110 = arith.constant 0 : index
    %c0_111 = arith.constant 0 : index
    %211 = vector.load %arg14[%c0_110, %c0_111] : memref<128x128xf32, #tpu.memory_space<vmem>>, vector<128x128xf32>
    %cst_112 = arith.constant dense<0.000000e+00> : vector<64x128xf32>
    %212 = tpu.matmul %210, %211, %cst_112 {dimension_numbers = #tpu.dot_dimension_numbers<[1], [0], [0], [1], [0, 0, 1, 1], [], []>} : vector<64x128xf32>, vector<128x128xf32>, vector<64x128xf32> -> vector<64x128xf32>
    %c0_113 = arith.constant 0 : index
    %c0_114 = arith.constant 0 : index
    %213 = vector.load %arg15[%c0_113, %c0_114] : memref<1x128xf32, #tpu.memory_space<vmem>>, vector<1x128xf32>
    %214 = vector.broadcast %213 : vector<1x128xf32> to vector<64x128xf32>
    %215 = arith.addf %212, %214 : vector<64x128xf32>
    %c0_115 = arith.constant 0 : index
    %c0_116 = arith.constant 0 : index
    %216 = vector.load %arg16[%c0_115, %c0_116] : memref<64x128xf32, #tpu.memory_space<vmem>>, vector<64x128xf32>
    tpu.vector_store %arg16[%c0_115, %c0_116], %215 {strides = array<i32>} : memref<64x128xf32, #tpu.memory_space<vmem>>, vector<64x128xf32>,
    return
  }
}

</mosaic_0001>

<bundles_post_ra>
// kernel: gmlp_node_forward.1
= control target key start
LH: loop header
LB: loop body
LE: loop exit
PB: predicated region body
PF: predicated region fallthrough
CT: control target
= control target key end

     0   :  { %vm865_vm0 = vcmask 523264   ;;  %s4211_s2 = inlined_call_operand.vmem [shape: f32[128,128], index: 2, kind: input, shape index: {}]   ;;  %s4212_s0 = inlined_call_operand.vmem [shape: f32[64,128], index: 0, kind: input, shape index: {}]   ;;  %s4213_s3 = inlined_call_operand.vmem [shape: f32[1,128], index: 3, kind: input, shape index: {}]   ;;  %s4214_s6 = inlined_call_operand.vmem [shape: f32[2,128,128], index: 6, kind: input, shape index: {}]   ;;  %s4215_s8 = inlined_call_operand.vmem [shape: f32[2,128,128], index: 8, kind: input, shape index: {}]   ;;  %s4216_s4 = inlined_call_operand.vmem [shape: f32[2,1,128], index: 4, kind: input, shape index: {}]   ;;  %s4217_s5 = inlined_call_operand.vmem [shape: f32[2,1,128], index: 5, kind: input, shape index: {}]   ;;  %s4218_s9 = inlined_call_operand.vmem [shape: f32[2,1,128], index: 9, kind: input, shape index: {}]   ;;  %s4219_s1 = inlined_call_operand.vmem [shape: f32[64,64], index: 1, kind: input, shape index: {}]   ;;  %s4220_s10 = inlined_call_operand.vmem [shape: f32[2,1,128], index: 10, kind: input, shape index: {}]   ;;  %s4221_s11 = inlined_call_operand.vmem [shape: f32[2,1,128], index: 11, kind: input, shape index: {}]   ;;  %s4222_s12 = inlined_call_operand.vmem [shape: f32[2,128,128], index: 12, kind: input, shape index: {}]   ;;  %s4223_s7 = inlined_call_operand.vmem [shape: f32[2,1,128], index: 7, kind: input, shape index: {}]   ;;  %s4224_s13 = inlined_call_operand.vmem [shape: f32[2,1,128], index: 13, kind: input, shape index: {}]   ;;  %s4225_s14 = inlined_call_operand.vmem [shape: f32[128,128], index: 14, kind: input, shape index: {}]   ;;  %s4226_s15 = inlined_call_operand.vmem [shape: f32[1,128], index: 15, kind: input, shape index: {}]   ;;  %s4227_s16 = inlined_call_operand.vmem [shape: f32[64,128], index: 16, kind: output, shape index: {}]  }
   0x1   :  { %4229 = sst [smem:[#allocation2_spill]] %s4211_s2  ;;  %v61_v4 = vld [vmem:[%s4212_s0] sm:$0xff]  ;;  %v62_v17 = vld [vmem:[%s4212_s0 + $0x8] sm:$0xff]  ;;  %v63_v18 = vld [vmem:[%s4212_s0 + $0x10] sm:$0xff] }
   0x2   :  { %s4230_s23 = sld [smem:[#allocation2_spill]]  ;;  %2549 = vmatprep.mubr.f32.mxu0 %v61_v4  ;;  %v64_v19 = vld [vmem:[%s4212_s0 + $0x18] sm:$0xff]  ;;  %v65_v20 = vld [vmem:[%s4212_s0 + $0x20] sm:$0xff]  ;;  %v66_v21 = vld [vmem:[%s4212_s0 + $0x28] sm:$0xff] }
   0x3   :  { %v67_v22 = vld [vmem:[%s4212_s0 + $0x30] sm:$0xff]  ;;  %v68_v23 = vld [vmem:[%s4212_s0 + $0x38] sm:$0xff]  ;;  %v3221_v24 = vld [vmem:[%s4213_s3] ss:$0 sm:$0xff] }
   0x4   :  { %v346_v38 = vld [vmem:[%s4214_s6 + $0x78] sm:$0xff]  ;;  %v345_v42 = vld [vmem:[%s4214_s6 + $0x70] sm:$0xff]  ;;  %v344_v45 = vld [vmem:[%s4214_s6 + $0x68] sm:$0xff] }
   0x5   :  { %v546_v39 = vld [vmem:[%s4215_s8 + $0x78] sm:$0xff]  ;;  %2561 = vmatprep.subr.mxu1 %v346_v38  ;;  %v545_v43 = vld [vmem:[%s4215_s8 + $0x70] sm:$0xff]  ;;  %v544_v46 = vld [vmem:[%s4215_s8 + $0x68] sm:$0xff] }
   0x6   :  { %2562 = vmatpush3.msra.mxu1 %v346_v38  ;;  %v343_v48 = vld [vmem:[%s4214_s6 + $0x60] sm:$0xff]  ;;  %v342_v52 = vld [vmem:[%s4214_s6 + $0x58] sm:$0xff]  ;;  %v341_v56 = vld [vmem:[%s4214_s6 + $0x50] sm:$0xff] }
   0x7   :  { %2563 = vmatprep.subr.mxu1 %v345_v42  ;;  %v543_v49 = vld [vmem:[%s4215_s8 + $0x60] sm:$0xff]  ;;  %v542_v53 = vld [vmem:[%s4215_s8 + $0x58] sm:$0xff]  ;;  %v541_v57 = vld [vmem:[%s4215_s8 + $0x50] sm:$0xff] }
   0x8   :  { %v84_v0 = vld [vmem:[%s4230_s23 + $0x78] sm:$0xff]  ;;  %v83_v1 = vld [vmem:[%s4230_s23 + $0x70] sm:$0xff]  ;;  %v82_v2 = vld [vmem:[%s4230_s23 + $0x68] sm:$0xff]  ;;  %2564 = vmatpush3.msra.mxu1 %v345_v42 }
   0x9   :  { %2517 = vmatprep.subr.mxu0 %v84_v0  ;;  %v81_v3 = vld [vmem:[%s4230_s23 + $0x60] sm:$0xff]  ;;  %v80_v5 = vld [vmem:[%s4230_s23 + $0x58] sm:$0xff]  ;;  %v79_v6 = vld [vmem:[%s4230_s23 + $0x50] sm:$0xff]  ;;  %2565 = vmatprep.subr.mxu1 %v344_v45 }
   0xa   :  { %2518 = vmatpush3.msra.mxu0 %v84_v0  ;;  %v78_v7 = vld [vmem:[%s4230_s23 + $0x48] sm:$0xff]  ;;  %v77_v8 = vld [vmem:[%s4230_s23 + $0x40] sm:$0xff]  ;;  %v76_v9 = vld [vmem:[%s4230_s23 + $0x38] sm:$0xff]  ;;  %2566 = vmatpush3.msra.mxu1 %v344_v45 }
   0xb   :  { %2519 = vmatprep.subr.mxu0 %v83_v1  ;;  %v75_v10 = vld [vmem:[%s4230_s23 + $0x30] sm:$0xff]  ;;  %v74_v11 = vld [vmem:[%s4230_s23 + $0x28] sm:$0xff]  ;;  %v73_v12 = vld [vmem:[%s4230_s23 + $0x20] sm:$0xff]  ;;  %2567 = vmatprep.subr.mxu1 %v343_v48 }
   0xc   :  { %2520 = vmatpush3.msra.mxu0 %v83_v1  ;;  %v72_v13 = vld [vmem:[%s4230_s23 + $0x18] sm:$0xff]  ;;  %v71_v14 = vld [vmem:[%s4230_s23 + $0x10] sm:$0xff]  ;;  %v70_v15 = vld [vmem:[%s4230_s23 + $0x8] sm:$0xff]  ;;  %2568 = vmatpush3.msra.mxu1 %v343_v48 }
   0xd   :  { %2521 = vmatprep.subr.mxu0 %v82_v2  ;;  %v69_v16 = vld [vmem:[%s4230_s23] sm:$0xff]  ;;  %2569 = vmatprep.subr.mxu1 %v342_v52  ;;  %v340_v59 = vld [vmem:[%s4214_s6 + $0x48] sm:$0xff]  ;;  %v338_v1 = vld [vmem:[%s4214_s6 + $0x38] sm:$0xff] }
   0xe   :  { %2522 = vmatpush3.msra.mxu0 %v82_v2  ;;  %2570 = vmatpush3.msra.mxu1 %v342_v52  ;;  %v540_v60 = vld [vmem:[%s4215_s8 + $0x48] sm:$0xff]  ;;  %v339_v62 = vld [vmem:[%s4214_s6 + $0x40] sm:$0xff]  ;;  %v538_v2 = vld [vmem:[%s4215_s8 + $0x38] sm:$0xff] }
   0xf   :  { %2523 = vmatprep.subr.mxu0 %v81_v3  ;;  %2571 = vmatprep.subr.mxu1 %v341_v56  ;;  %v539_v63 = vld [vmem:[%s4215_s8 + $0x40] sm:$0xff]  ;;  %v537_v4 = vld [vmem:[%s4215_s8 + $0x30] sm:$0xff] }
  0x10   :  { %2524 = vmatpush3.msra.mxu0 %v81_v3  ;;  %2572 = vmatpush3.msra.mxu1 %v341_v56  ;;  %v337_v3 = vld [vmem:[%s4214_s6 + $0x30] sm:$0xff] }
  0x11   :  { %2525 = vmatprep.subr.mxu0 %v80_v5  ;;  %2573 = vmatprep.subr.mxu1 %v340_v59 }
  0x12   :  { %2526 = vmatpush3.msra.mxu0 %v80_v5  ;;  %2574 = vmatpush3.msra.mxu1 %v340_v59  ;;  %v336_v5 = vld [vmem:[%s4214_s6 + $0x28] sm:$0xff] }
  0x13   :  { %2527 = vmatprep.subr.mxu0 %v79_v6  ;;  %2575 = vmatprep.subr.mxu1 %v339_v62 }
  0x14   :  { %2528 = vmatpush3.msra.mxu0 %v79_v6  ;;  %2576 = vmatpush3.msra.mxu1 %v339_v62  ;;  %v536_v6 = vld [vmem:[%s4215_s8 + $0x28] sm:$0xff] }
  0x15   :  { %2529 = vmatprep.subr.mxu0 %v78_v7  ;;  %2577 = vmatprep.subr.mxu1 %v338_v1 }
  0x16   :  { %2530 = vmatpush3.msra.mxu0 %v78_v7  ;;  %2578 = vmatpush3.msra.mxu1 %v338_v1  ;;  %v335_v7 = vld [vmem:[%s4214_s6 + $0x20] sm:$0xff] }
  0x17   :  { %2531 = vmatprep.subr.mxu0 %v77_v8  ;;  %2579 = vmatprep.subr.mxu1 %v337_v3 }
  0x18   :  { %2532 = vmatpush3.msra.mxu0 %v77_v8  ;;  %2580 = vmatpush3.msra.mxu1 %v337_v3  ;;  %v535_v8 = vld [vmem:[%s4215_s8 + $0x20] sm:$0xff] }
  0x19   :  { %2533 = vmatprep.subr.mxu0 %v76_v9  ;;  %2581 = vmatprep.subr.mxu1 %v336_v5 }
  0x1a   :  { %2534 = vmatpush3.msra.mxu0 %v76_v9  ;;  %2582 = vmatpush3.msra.mxu1 %v336_v5  ;;  %v334_v9 = vld [vmem:[%s4214_s6 + $0x18] sm:$0xff] }
  0x1b   :  { %2535 = vmatprep.subr.mxu0 %v75_v10  ;;  %2583 = vmatprep.subr.mxu1 %v335_v7 }
  0x1c   :  { %2536 = vmatpush3.msra.mxu0 %v75_v10  ;;  %v534_v10 = vld [vmem:[%s4215_s8 + $0x18] sm:$0xff]  ;;  %2584 = vmatpush3.msra.mxu1 %v335_v7 }
  0x1d   :  { %2537 = vmatprep.subr.mxu0 %v74_v11  ;;  %2585 = vmatprep.subr.mxu1 %v334_v9 }
  0x1e   :  { %2538 = vmatpush3.msra.mxu0 %v74_v11  ;;  %v333_v11 = vld [vmem:[%s4214_s6 + $0x10] sm:$0xff]  ;;  %2586 = vmatpush3.msra.mxu1 %v334_v9 }
  0x1f   :  { %2539 = vmatprep.subr.mxu0 %v73_v12  ;;  %2587 = vmatprep.subr.mxu1 %v333_v11 }
  0x20   :  { %2540 = vmatpush3.msra.mxu0 %v73_v12  ;;  %v533_v12 = vld [vmem:[%s4215_s8 + $0x10] sm:$0xff]  ;;  %2588 = vmatpush3.msra.mxu1 %v333_v11 }
  0x21   :  { %2541 = vmatprep.subr.mxu0 %v72_v13 }
  0x22   :  { %2542 = vmatpush3.msra.mxu0 %v72_v13  ;;  %v332_v13 = vld [vmem:[%s4214_s6 + $0x8] sm:$0xff] }
  0x23   :  { %2543 = vmatprep.subr.mxu0 %v71_v14  ;;  %2589 = vmatprep.subr.mxu1 %v332_v13 }
  0x24   :  { %2544 = vmatpush3.msra.mxu0 %v71_v14  ;;  %v532_v14 = vld [vmem:[%s4215_s8 + $0x8] sm:$0xff]  ;;  %2590 = vmatpush3.msra.mxu1 %v332_v13 }
  0x25   :  { %2545 = vmatprep.subr.mxu0 %v70_v15 }
  0x26   :  { %2546 = vmatpush3.msra.mxu0 %v70_v15  ;;  %v331_v15 = vld [vmem:[%s4214_s6] sm:$0xff] }
  0x27   :  { %2547 = vmatprep.subr.mxu0 %v69_v16  ;;  %2591 = vmatprep.subr.mxu1 %v331_v15 }
  0x28   :  { %2548 = vmatpush3.msra.mxu0 %v69_v16  ;;  %v531_v16 = vld [vmem:[%s4215_s8] sm:$0xff]  ;;  %2592 = vmatpush3.msra.mxu1 %v331_v15 }
  0x29   :  { %2550 = vmatmul.mubr.f32.vlgmr.msra.gmra.mxu0 %v62_v17  ;;  %2605 = vmatprep.subr.mxu0 %v546_v39 }
  0x2a   :  { %2552 = vmatprep.mubr.f32.mxu0 %v63_v18  ;;  %2606 = vmatpush3.msra.mxu0 %v546_v39 }
  0x2b   :  { %2607 = vmatprep.subr.mxu0 %v545_v43 }
  0x2c   :  { %2608 = vmatpush3.msra.mxu0 %v545_v43 }
  0x2d   :  { %2553 = vmatmul.mubr.f32.gmra.mxu0 %v64_v19  ;;  %2609 = vmatprep.subr.mxu0 %v544_v46 }
  0x2e   :  { %2555 = vmatprep.mubr.f32.mxu0 %v65_v20  ;;  %2610 = vmatpush3.msra.mxu0 %v544_v46 }
  0x2f   :  { %2611 = vmatprep.subr.mxu0 %v543_v49 }
  0x30   :  { %2612 = vmatpush3.msra.mxu0 %v543_v49 }
  0x31   :  { %2556 = vmatmul.mubr.f32.gmra.mxu0 %v66_v21  ;;  %2613 = vmatprep.subr.mxu0 %v542_v53 }
  0x32   :  { %2558 = vmatprep.mubr.f32.mxu0 %v67_v22  ;;  %2614 = vmatpush3.msra.mxu0 %v542_v53 }
  0x33   :  { %2615 = vmatprep.subr.mxu0 %v541_v57 }
  0x34   :  { %2616 = vmatpush3.msra.mxu0 %v541_v57 }
  0x35   :  { %2559 = vmatmul.mubr.f32.gmra.mxu0 %v68_v23  ;;  %2617 = vmatprep.subr.mxu0 %v540_v60 }
  0x36   :  { %2618 = vmatpush3.msra.mxu0 %v540_v60 }
  0x37   :  { %2619 = vmatprep.subr.mxu0 %v539_v63 }
  0x38   :  { %2620 = vmatpush3.msra.mxu0 %v539_v63 }
  0x39   :  { %2621 = vmatprep.subr.mxu0 %v538_v2 }
  0x3a   :  { %2622 = vmatpush3.msra.mxu0 %v538_v2 }
  0x3b   :  { %2623 = vmatprep.subr.mxu0 %v537_v4 }
  0x3c   :  { %2624 = vmatpush3.msra.mxu0 %v537_v4 }
  0x3d   :  { %2625 = vmatprep.subr.mxu0 %v536_v6 }
  0x3e   :  { %2626 = vmatpush3.msra.mxu0 %v536_v6 }
  0x3f   :  { %2627 = vmatprep.subr.mxu0 %v535_v8 }
  0x40   :  { %2628 = vmatpush3.msra.mxu0 %v535_v8 }
  0x41   :  { %2629 = vmatprep.subr.mxu0 %v534_v10 }
  0x42   :  { %2630 = vmatpush3.msra.mxu0 %v534_v10  ;;  %v3390_v10 = vld [vmem:[%s4216_s4] ss:$0 sm:$0xff] }
  0x43   :  { %2631 = vmatprep.subr.mxu0 %v533_v12 }
  0x44   :  { %2632 = vmatpush3.msra.mxu0 %v533_v12 }
  0x45   :  { %2633 = vmatprep.subr.mxu0 %v532_v14 }
  0x46   :  { %2634 = vmatpush3.msra.mxu0 %v532_v14 }
  0x47   :  { %2635 = vmatprep.subr.mxu0 %v531_v16 }
  0x48   :  { %2636 = vmatpush3.msra.mxu0 %v531_v16 }
  0xe9   :  { %v2551_v25 = vpop.f32.mrf.mxu0 }
  0xea   :  { %v3224_v26 = vadd.f32 %v2551_v25, %v3221_v24 }
  0xeb   :  { %v158_v27 = vpop.f32.mrf.mxu0 }
  0xec   :  { %v3227_v28 = vadd.f32 %v3221_v24, %v158_v27  ;;  %201 = vadd.xlane.f32.xlu0 %v3224_v26  ;;  %v216_v29 = vmul.f32 %v3224_v26, %v3224_v26 }
  0xed   :  { %v2554_v30 = vpop.f32.mrf.mxu0 }
  0xee   :  { %225 = vadd.xlane.f32.xlu1 %v216_v29  ;;  %v215_v33 = vmul.f32 %v3227_v28, %v3227_v28  ;;  %v3239_v35 = vadd.f32 %v2554_v30, %v3221_v24 }
  0xef   :  { %v168_v31 = vpop.f32.mrf.mxu0 }
  0xf0   :  { %v3233_v32 = vadd.f32 %v3221_v24, %v168_v31  ;;  %199 = vadd.xlane.f32.xlu0 %v3227_v28  ;;  %v218_v41 = vmul.f32 %v3239_v35, %v3239_v35 }
  0xf1   :  { %v2557_v34 = vpop.f32.mrf.mxu0 }
  0xf2   :  { %223 = vadd.xlane.f32.xlu1 %v215_v33  ;;  %v217_v37 = vmul.f32 %v3233_v32, %v3233_v32  ;;  %v3269_v47 = vadd.f32 %v2557_v34, %v3221_v24 }
  0xf3   :  { %v178_v36 = vpop.f32.mrf.mxu0 }
  0xf4   :  { %203 = vadd.xlane.f32.xlu0 %v3233_v32  ;;  %v3252_v40 = vadd.f32 %v3221_v24, %v178_v36  ;;  %v220_v55 = vmul.f32 %v3269_v47, %v3269_v47 }
  0xf5   :  { %v2560_v44 = vpop.f32.mrf.mxu0 }
  0xf6   :  { %205 = vadd.xlane.f32.xlu1 %v3239_v35  ;;  %v219_v51 = vmul.f32 %v3252_v40, %v3252_v40  ;;  %v3299_v58 = vadd.f32 %v2560_v44, %v3221_v24 }
  0xf7   :  { %v188_v50 = vpop.f32.mrf.mxu0 }
  0xf8   :  { %227 = vadd.xlane.f32.xlu0 %v217_v37  ;;  %v3288_v54 = vadd.f32 %v3221_v24, %v188_v50  ;;  %v222_v0 = vmul.f32 %v3299_v58, %v3299_v58 }
  0xfa   :  { %229 = vadd.xlane.f32.xlu1 %v218_v41  ;;  %v221_v61 = vmul.f32 %v3288_v54, %v3288_v54 }
  0xfc   :  { %207 = vadd.xlane.f32.xlu0 %v3252_v40 }
  0xfe   :  { %209 = vadd.xlane.f32.xlu1 %v3269_v47 }
 0x100   :  { %231 = vadd.xlane.f32.xlu0 %v219_v51 }
 0x102   :  { %233 = vadd.xlane.f32.xlu1 %v220_v55 }
 0x104   :  { %211 = vadd.xlane.f32.xlu0 %v3288_v54 }
 0x106   :  { %213 = vadd.xlane.f32.xlu1 %v3299_v58 }
 0x108   :  { %235 = vadd.xlane.f32.xlu0 %v221_v61 }
 0x10a   :  { %237 = vadd.xlane.f32.xlu1 %v222_v0 }
 0x175   :  { %v202_v17 = vpop.xlane.xlu0 %201 }
 0x176   :  { %v240_v18 = vmul.f32 0.03125, %v202_v17 }
 0x177   :  { %v226_v19 = vpop.xlane.xlu1 %225 }
 0x178   :  { %v256_v20 = vmul.f32 %v240_v18, %v240_v18  ;;  %v248_v21 = vmul.f32 0.03125, %v226_v19  ;;  %v272_v62 = vsub.f32 %v3224_v26, %v240_v18  ;;  %v2208_v19 = vld [vmem:[%s4217_s5] ss:$0 sm:$0xff] }
 0x179   :  { %v200_v22 = vpop.xlane.xlu0 %199 }
 0x17a   :  { %v264_v23 = vsub.f32 %v248_v21, %v256_v20  ;;  %v239_v24 = vmul.f32 0.03125, %v200_v22 }
 0x17b   :  { %v224_v25 = vpop.xlane.xlu1 %223 }
 0x17c   :  { %v280_v27 = vadd.f32 1e-05, %v264_v23  ;;  %v255_v29 = vmul.f32 %v239_v24, %v239_v24  ;;  %v247_v30 = vmul.f32 0.03125, %v224_v25  ;;  %v271_v8 = vsub.f32 %v3227_v28, %v239_v24 }
 0x17d   :  { %v204_v31 = vpop.xlane.xlu0 %203 }
 0x17e   :  { %2925 = vrsqrt.f32 %v280_v27  ;;  %v263_v33 = vsub.f32 %v247_v30, %v255_v29  ;;  %v3367_v34 = vmul.f32 0.03125, %v204_v31 }
 0x17f   :  { %v206_v36 = vpop.xlane.xlu1 %205 }
 0x180   :  { %v279_v37 = vadd.f32 1e-05, %v263_v33  ;;  %v3369_v38 = vmul.f32 0.03125, %v206_v36  ;;  %v257_v41 = vmul.f32 %v3367_v34, %v3367_v34  ;;  %v273_v21 = vsub.f32 %v3233_v32, %v3367_v34 }
 0x181   :  { %v228_v39 = vpop.xlane.xlu0 %227 }
 0x182   :  { %2927 = vrsqrt.f32 %v279_v37  ;;  %v249_v42 = vmul.f32 0.03125, %v228_v39  ;;  %v258_v44 = vmul.f32 %v3369_v38, %v3369_v38  ;;  %v274_v27 = vsub.f32 %v3239_v35, %v3369_v38 }
 0x183   :  { %v230_v43 = vpop.xlane.xlu1 %229 }
 0x184   :  { %v265_v45 = vsub.f32 %v249_v42, %v257_v41  ;;  %v250_v46 = vmul.f32 0.03125, %v230_v43 }
 0x185   :  { %v208_v48 = vpop.xlane.xlu0 %207 }
 0x186   :  { %v281_v49 = vadd.f32 1e-05, %v265_v45  ;;  %v266_v50 = vsub.f32 %v250_v46, %v258_v44  ;;  %v3375_v51 = vmul.f32 0.03125, %v208_v48 }
 0x187   :  { %v210_v52 = vpop.xlane.xlu1 %209 }
 0x188   :  { %2929 = vrsqrt.f32 %v281_v49  ;;  %v282_v53 = vadd.f32 1e-05, %v266_v50  ;;  %v3377_v55 = vmul.f32 0.03125, %v210_v52  ;;  %v259_v57 = vmul.f32 %v3375_v51, %v3375_v51 }
 0x189   :  { %v232_v56 = vpop.xlane.xlu0 %231  ;;  %v275_v38 = vsub.f32 %v3252_v40, %v3375_v51 }
 0x18a   :  { %2931 = vrsqrt.f32 %v282_v53  ;;  %v251_v59 = vmul.f32 0.03125, %v232_v56  ;;  %v260_v63 = vmul.f32 %v3377_v55, %v3377_v55  ;;  %v276_v46 = vsub.f32 %v3269_v47, %v3377_v55 }
 0x18b   :  { %v2926_v60 = vpop.eup %2925  ;;  %v234_v61 = vpop.xlane.xlu1 %233 }
 0x18c   :  { %v267_v0 = vsub.f32 %v251_v59, %v259_v57  ;;  %v252_v1 = vmul.f32 0.03125, %v234_v61  ;;  %v296_v6 = vmul.f32 %v2926_v60, %v272_v62 }
 0x18d   :  { %v212_v2 = vpop.xlane.xlu0 %211 }
 0x18e   :  { %v283_v3 = vadd.f32 1e-05, %v267_v0  ;;  %v268_v4 = vsub.f32 %v252_v1, %v260_v63  ;;  %v3384_v5 = vmul.f32 0.03125, %v212_v2  ;;  %v310_v17 = vmul.f32 %v3390_v10, %v296_v6  ;;  %v2210_v6 = vld [vmem:[%s4218_s9] ss:$0 sm:$0xff] }
 0x18f   :  { %v2928_v7 = vpop.eup %2927  ;;  %v214_v9 = vpop.xlane.xlu1 %213 }
 0x190   :  { %2933 = vrsqrt.f32 %v283_v3  ;;  %v284_v11 = vadd.f32 1e-05, %v268_v4  ;;  %v246_v12 = vmul.f32 0.03125, %v214_v9  ;;  %v295_v14 = vmul.f32 %v2928_v7, %v271_v8 }
 0x191   :  { %v236_v13 = vpop.xlane.xlu0 %235  ;;  %v261_v15 = vmul.f32 %v3384_v5, %v3384_v5  ;;  %v324_v33 = vadd.f32 %v2208_v19, %v310_v17  ;;  %v277_v51 = vsub.f32 %v3288_v54, %v3384_v5 }
 0x192   :  { %2935 = vrsqrt.f32 %v284_v11  ;;  %v253_v16 = vmul.f32 0.03125, %v236_v13  ;;  %v309_v20 = vmul.f32 %v3390_v10, %v295_v14  ;;  %v262_v22 = vmul.f32 %v246_v12, %v246_v12 }
 0x193   :  { %v238_v18 = vpop.xlane.xlu1 %237  ;;  %v278_v60 = vsub.f32 %v3299_v58, %v246_v12 }
 0x194   :  { %v269_v23 = vsub.f32 %v253_v16, %v261_v15  ;;  %v254_v24 = vmul.f32 0.03125, %v238_v18  ;;  %v323_v29 = vadd.f32 %v2208_v19, %v309_v20 }
 0x195   :  { %v2930_v25 = vpop.eup %2929 }
 0x196   :  { %v285_v30 = vadd.f32 1e-05, %v269_v23  ;;  %v270_v31 = vsub.f32 %v254_v24, %v262_v22  ;;  %v297_v36 = vmul.f32 %v2930_v25, %v273_v21  ;;  %2593 = vmatprep.mubr.f32.mxu1 %v323_v29  ;;  %2637 = vmatprep.mubr.f32.mxu0 %v323_v29 }
 0x197   :  { %v2932_v37 = vpop.eup %2931  ;;  %2594 = vmatmul.mubr.f32.vlgmr.msra.gmra.mxu1 %v324_v33  ;;  %2638 = vmatmul.mubr.f32.vlgmr.msra.gmra.mxu0 %v324_v33 }
 0x198   :  { %2937 = vrsqrt.f32 %v285_v30  ;;  %v286_v39 = vadd.f32 1e-05, %v270_v31  ;;  %v311_v34 = vmul.f32 %v3390_v10, %v297_v36  ;;  %v298_v41 = vmul.f32 %v2932_v37, %v274_v27 }
 0x19a   :  { %2939 = vrsqrt.f32 %v286_v39  ;;  %v325_v42 = vadd.f32 %v2208_v19, %v311_v34  ;;  %v312_v43 = vmul.f32 %v3390_v10, %v298_v41 }
 0x19c   :  { %2596 = vmatprep.mubr.f32.mxu1 %v325_v42  ;;  %2640 = vmatprep.mubr.f32.mxu0 %v325_v42  ;;  %v326_v44 = vadd.f32 %v2208_v19, %v312_v43 }
 0x19d   :  { %v2934_v45 = vpop.eup %2933 }
 0x19e   :  { %2597 = vmatmul.mubr.f32.gmra.mxu1 %v326_v44  ;;  %2641 = vmatmul.mubr.f32.gmra.mxu0 %v326_v44  ;;  %v299_v48 = vmul.f32 %v2934_v45, %v275_v38 }
 0x19f   :  { %v2936_v49 = vpop.eup %2935 }
 0x1a0   :  { %v313_v50 = vmul.f32 %v3390_v10, %v299_v48  ;;  %v300_v52 = vmul.f32 %v2936_v49, %v276_v46 }
 0x1a2   :  { %v327_v53 = vadd.f32 %v2208_v19, %v313_v50  ;;  %v314_v56 = vmul.f32 %v3390_v10, %v300_v52 }
 0x1a4   :  { %2599 = vmatprep.mubr.f32.mxu1 %v327_v53  ;;  %2643 = vmatprep.mubr.f32.mxu0 %v327_v53  ;;  %v328_v57 = vadd.f32 %v2208_v19, %v314_v56 }
 0x1a5   :  { %v2938_v59 = vpop.eup %2937 }
 0x1a6   :  { %2600 = vmatmul.mubr.f32.gmra.mxu1 %v328_v57  ;;  %2644 = vmatmul.mubr.f32.gmra.mxu0 %v328_v57  ;;  %v301_v55 = vmul.f32 %v2938_v59, %v277_v51 }
 0x1a7   :  { %v2940_v61 = vpop.eup %2939 }
 0x1a8   :  { %v315_v62 = vmul.f32 %v3390_v10, %v301_v55  ;;  %v302_v63 = vmul.f32 %v2940_v61, %v278_v60 }
 0x1aa   :  { %v329_v0 = vadd.f32 %v2208_v19, %v315_v62  ;;  %v316_v1 = vmul.f32 %v3390_v10, %v302_v63 }
 0x1ac   :  { %2602 = vmatprep.mubr.f32.mxu1 %v329_v0  ;;  %2646 = vmatprep.mubr.f32.mxu0 %v329_v0  ;;  %v330_v2 = vadd.f32 %v2208_v19, %v316_v1 }
 0x1ae   :  { %2603 = vmatmul.mubr.f32.gmra.mxu1 %v330_v2  ;;  %2647 = vmatmul.mubr.f32.gmra.mxu0 %v330_v2 }
 0x257   :  { %v2639_v3 = vpop.f32.mrf.mxu0 }
 0x258   :  { %v3421_v14 = vadd.f32 %v2639_v3, %v2210_v6 }
 0x259   :  { %v620_v4 = vpop.f32.mrf.mxu0 }
 0x25a   :  { %v660_v22 = vmul.f32 %v3421_v14, %v3421_v14  ;;  %v3432_v27 = vadd.f32 %v2210_v6, %v620_v4 }
 0x25c   :  { %v668_v33 = vmul.f32 %v660_v22, %v3421_v14  ;;  %v659_v34 = vmul.f32 %v3432_v27, %v3432_v27 }
 0x25e   :  { %v2642_v5 = vpop.f32.mrf.mxu0  ;;  %v676_v46 = vmul.f32 0.044715, %v668_v33  ;;  %v667_v50 = vmul.f32 %v659_v34, %v3432_v27 }
 0x25f   :  { %v636_v7 = vadd.f32 %v2642_v5, %v2210_v6 }
 0x260   :  { %v630_v8 = vpop.f32.mrf.mxu0  ;;  %v684_v57 = vadd.f32 %v676_v46, %v3421_v14  ;;  %v675_v60 = vmul.f32 0.044715, %v667_v50 }
 0x261   :  { %v662_v9 = vmul.f32 %v636_v7, %v636_v7  ;;  %v3419_v11 = vadd.f32 %v2210_v6, %v630_v8 }
 0x262   :  { %v692_v2 = vmul.f32 0.7978846, %v684_v57  ;;  %v683_v3 = vadd.f32 %v675_v60, %v3432_v27 }
 0x263   :  { %v670_v12 = vmul.f32 %v662_v9, %v636_v7  ;;  %v661_v15 = vmul.f32 %v3419_v11, %v3419_v11 }
 0x264   :  { %v691_v9 = vmul.f32 0.7978846, %v683_v3 }
 0x265   :  { %v678_v13 = vmul.f32 0.044715, %v670_v12  ;;  %v669_v23 = vmul.f32 %v661_v15, %v3419_v11 }
 0x266   :  { %v2645_v10 = vpop.f32.mrf.mxu0 }
 0x267   :  { %v646_v16 = vadd.f32 %v2645_v10, %v2210_v6  ;;  %v686_v17 = vadd.f32 %v678_v13, %v636_v7  ;;  %v677_v36 = vmul.f32 0.044715, %v669_v23 }
 0x268   :  { %v640_v18 = vpop.f32.mrf.mxu0 }
 0x269   :  { %v664_v19 = vmul.f32 %v646_v16, %v646_v16  ;;  %v3425_v20 = vadd.f32 %v2210_v6, %v640_v18  ;;  %v694_v21 = vmul.f32 0.7978846, %v686_v17  ;;  %v685_v48 = vadd.f32 %v677_v36, %v3419_v11 }
 0x26b   :  { %v672_v24 = vmul.f32 %v664_v19, %v646_v16  ;;  %v663_v25 = vmul.f32 %v3425_v20, %v3425_v20  ;;  %2941 = vtanh.f32 %v694_v21  ;;  %v693_v59 = vmul.f32 0.7978846, %v685_v48 }
 0x26d   :  { %v680_v29 = vmul.f32 0.044715, %v672_v24  ;;  %v671_v30 = vmul.f32 %v663_v25, %v3425_v20 }
 0x26e   :  { %v2648_v31 = vpop.f32.mrf.mxu0 }
 0x26f   :  { %v688_v37 = vadd.f32 %v680_v29, %v646_v16  ;;  %v679_v39 = vmul.f32 0.044715, %v671_v30  ;;  %v656_v41 = vadd.f32 %v2648_v31, %v2210_v6 }
 0x270   :  { %v650_v42 = vpop.f32.mrf.mxu0 }
 0x271   :  { %v696_v43 = vmul.f32 0.7978846, %v688_v37  ;;  %v687_v38 = vadd.f32 %v679_v39, %v3425_v20  ;;  %v666_v44 = vmul.f32 %v656_v41, %v656_v41  ;;  %v651_v45 = vadd.f32 %v2210_v6, %v650_v42 }
 0x273   :  { %2943 = vtanh.f32 %v696_v43  ;;  %v695_v49 = vmul.f32 0.7978846, %v687_v38  ;;  %v674_v52 = vmul.f32 %v666_v44, %v656_v41  ;;  %v665_v53 = vmul.f32 %v651_v45, %v651_v45 }
 0x275   :  { %2945 = vtanh.f32 %v695_v49  ;;  %v682_v56 = vmul.f32 0.044715, %v674_v52  ;;  %v673_v51 = vmul.f32 %v665_v53, %v651_v45 }
 0x276   :  { %2947 = vtanh.f32 %v693_v59 }
 0x277   :  { %v690_v55 = vadd.f32 %v682_v56, %v656_v41  ;;  %v681_v61 = vmul.f32 0.044715, %v673_v51 }
 0x278   :  { %v2942_v62 = vpop.eup %2941 }
 0x279   :  { %v698_v63 = vmul.f32 0.7978846, %v690_v55  ;;  %v689_v0 = vadd.f32 %v681_v61, %v651_v45  ;;  %v710_v1 = vadd.f32 1.0, %v2942_v62 }
 0x27b   :  { %2949 = vtanh.f32 %v698_v63  ;;  %v697_v4 = vmul.f32 0.7978846, %v689_v0  ;;  %v718_v5 = vmul.f32 0.5, %v710_v1 }
 0x27d   :  { %2951 = vtanh.f32 %v697_v4  ;;  %v3443_v6 = vmul.f32 %v718_v5, %v636_v7 }
 0x27e   :  { %2953 = vtanh.f32 %v692_v2 }
 0x27f   :  { %739 = vadd.xlane.f32.xlu1 %v3443_v6  ;;  %2955 = vtanh.f32 %v691_v9  ;;  %v752_v48 = vmul.f32 %v3443_v6, %v3443_v6 }
 0x280   :  { %v2944_v8 = vpop.eup %2943 }
 0x281   :  { %v712_v12 = vadd.f32 1.0, %v2944_v8 }
 0x282   :  { %v2946_v13 = vpop.eup %2945 }
 0x283   :  { %v720_v10 = vmul.f32 0.5, %v712_v12  ;;  %v711_v15 = vadd.f32 1.0, %v2946_v13  ;;  %v2948_v7 = vpop.eup %2947 }
 0x285   :  { %v3446_v17 = vmul.f32 %v720_v10, %v646_v16  ;;  %v719_v18 = vmul.f32 0.5, %v711_v15  ;;  %v709_v16 = vadd.f32 1.0, %v2948_v7 }
 0x287   :  { %743 = vadd.xlane.f32.xlu1 %v3446_v17  ;;  %v754_v19 = vmul.f32 %v3446_v17, %v3446_v17  ;;  %v3452_v22 = vmul.f32 %v719_v18, %v3425_v20  ;;  %v717_v37 = vmul.f32 0.5, %v709_v16 }
 0x288   :  { %v2950_v21 = vpop.eup %2949 }
 0x289   :  { %767 = vadd.xlane.f32.xlu0 %v754_v19  ;;  %v714_v23 = vadd.f32 1.0, %v2950_v21  ;;  %v753_v20 = vmul.f32 %v3452_v22, %v3452_v22  ;;  %v3464_v42 = vmul.f32 %v717_v37, %v3419_v11 }
 0x28a   :  { %v2952_v24 = vpop.eup %2951 }
 0x28b   :  { %741 = vadd.xlane.f32.xlu1 %v3452_v22  ;;  %v722_v25 = vmul.f32 0.5, %v714_v23  ;;  %v713_v29 = vadd.f32 1.0, %v2952_v24  ;;  %v2954_v30 = vpop.eup %2953  ;;  %v751_v49 = vmul.f32 %v3464_v42, %v3464_v42 }
 0x28c   :  { %v708_v39 = vadd.f32 1.0, %v2954_v30  ;;  %v2956_v34 = vpop.eup %2955 }
 0x28d   :  { %v3455_v31 = vmul.f32 %v722_v25, %v656_v41  ;;  %v721_v33 = vmul.f32 0.5, %v713_v29  ;;  %v707_v41 = vadd.f32 1.0, %v2956_v34 }
 0x28e   :  { %v716_v43 = vmul.f32 0.5, %v708_v39 }
 0x28f   :  { %747 = vadd.xlane.f32.xlu0 %v3455_v31  ;;  %v3458_v36 = vmul.f32 %v721_v33, %v651_v45  ;;  %v756_v38 = vmul.f32 %v3455_v31, %v3455_v31  ;;  %v715_v45 = vmul.f32 0.5, %v707_v41 }
 0x290   :  { %v3470_v44 = vmul.f32 %v716_v43, %v3421_v14 }
 0x291   :  { %745 = vadd.xlane.f32.xlu1 %v3458_v36  ;;  %v755_v46 = vmul.f32 %v3458_v36, %v3458_v36  ;;  %v3476_v11 = vmul.f32 %v715_v45, %v3432_v27  ;;  %v53_v27 = vld [vmem:[%s4219_s1] sm:$0xff] }
 0x292   :  { %v750_v50 = vmul.f32 %v3470_v44, %v3470_v44  ;;  %2665 = vmatprep.mubr.msk.f32.mxu1 %vm865_vm0, %v53_v27 }
 0x293   :  { %765 = vadd.xlane.f32.xlu0 %v753_v20  ;;  %v749_v14 = vmul.f32 %v3476_v11, %v3476_v11 }
 0x295   :  { %737 = vadd.xlane.f32.xlu1 %v3464_v42 }
 0x297   :  { %771 = vadd.xlane.f32.xlu0 %v756_v38 }
 0x299   :  { %735 = vadd.xlane.f32.xlu1 %v3470_v44 }
 0x29b   :  { %769 = vadd.xlane.f32.xlu0 %v755_v46 }
 0x29d   :  { %733 = vadd.xlane.f32.xlu1 %v3476_v11 }
 0x29f   :  { %763 = vadd.xlane.f32.xlu0 %v752_v48 }
 0x2a1   :  { %757 = vadd.xlane.f32.xlu1 %v749_v14 }
 0x2a3   :  { %761 = vadd.xlane.f32.xlu0 %v751_v49 }
 0x2a7   :  { %759 = vadd.xlane.f32.xlu0 %v750_v50 }
 0x308   :  { %v740_v52 = vpop.xlane.xlu1 %739 }
 0x309   :  { %v3501_v19 = vmul.f32 0.03125, %v740_v52 }
 0x30b   :  { %v792_v39 = vmul.f32 %v3501_v19, %v3501_v19 }
 0x310   :  { %v744_v53 = vpop.xlane.xlu1 %743 }
 0x311   :  { %v3491_v51 = vmul.f32 0.03125, %v744_v53 }
 0x312   :  { %v768_v56 = vpop.xlane.xlu0 %767 }
 0x313   :  { %v794_v60 = vmul.f32 %v3491_v51, %v3491_v51  ;;  %v786_v55 = vmul.f32 0.03125, %v768_v56 }
 0x314   :  { %v742_v57 = vpop.xlane.xlu1 %741 }
 0x315   :  { %v3495_v62 = vmul.f32 0.03125, %v742_v57  ;;  %v802_v2 = vsub.f32 %v786_v55, %v794_v60 }
 0x317   :  { %v793_v4 = vmul.f32 %v3495_v62, %v3495_v62  ;;  %v818_v10 = vadd.f32 1e-05, %v802_v2  ;;  %v810_v2 = vsub.f32 %v3446_v17, %v3491_v51  ;;  %v2212_v17 = vld [vmem:[%s4221_s11] ss:$0 sm:$0xff] }
 0x318   :  { %v748_v59 = vpop.xlane.xlu0 %747 }
 0x319   :  { %v780_v0 = vmul.f32 0.03125, %v748_v59  ;;  %2957 = vrsqrt.f32 %v818_v10 }
 0x31a   :  { %v746_v61 = vpop.xlane.xlu1 %745 }
 0x31b   :  { %v796_v8 = vmul.f32 %v780_v0, %v780_v0  ;;  %v3499_v9 = vmul.f32 0.03125, %v746_v61  ;;  %v812_v61 = vsub.f32 %v3455_v31, %v780_v0 }
 0x31c   :  { %v766_v63 = vpop.xlane.xlu0 %765 }
 0x31d   :  { %v785_v1 = vmul.f32 0.03125, %v766_v63  ;;  %v795_v21 = vmul.f32 %v3499_v9, %v3499_v9 }
 0x31e   :  { %v738_v3 = vpop.xlane.xlu1 %737 }
 0x31f   :  { %v801_v12 = vsub.f32 %v785_v1, %v793_v4  ;;  %v3507_v33 = vmul.f32 0.03125, %v738_v3 }
 0x320   :  { %v772_v5 = vpop.xlane.xlu0 %771 }
 0x321   :  { %v788_v13 = vmul.f32 0.03125, %v772_v5  ;;  %v817_v23 = vadd.f32 1e-05, %v801_v12  ;;  %v791_v46 = vmul.f32 %v3507_v33, %v3507_v33  ;;  %v2211_v12 = vld [vmem:[%s4220_s10] ss:$0 sm:$0xff] }
 0x322   :  { %v736_v15 = vpop.xlane.xlu1 %735 }
 0x323   :  { %v804_v18 = vsub.f32 %v788_v13, %v796_v8  ;;  %v3515_v14 = vmul.f32 0.03125, %v736_v15  ;;  %v809_v8 = vsub.f32 %v3452_v22, %v3495_v62  ;;  %v811_v13 = vsub.f32 %v3458_v36, %v3499_v9 }
 0x324   :  { %v770_v7 = vpop.xlane.xlu0 %769  ;;  %v808_v22 = vsub.f32 %v3443_v6, %v3501_v19 }
 0x325   :  { %v820_v24 = vadd.f32 1e-05, %v804_v18  ;;  %v787_v25 = vmul.f32 0.03125, %v770_v7  ;;  %v790_v57 = vmul.f32 %v3515_v14, %v3515_v14 }
 0x326   :  { %v734_v29 = vpop.xlane.xlu1 %733  ;;  %v2958_v55 = vpop.eup %2957 }
 0x327   :  { %2959 = vrsqrt.f32 %v820_v24  ;;  %v803_v16 = vsub.f32 %v787_v25, %v795_v21  ;;  %v3505_v30 = vmul.f32 0.03125, %v734_v29  ;;  %v834_v0 = vmul.f32 %v2958_v55, %v810_v2  ;;  %v60_v55 = vld [vmem:[%s4219_s1 + $0x38] sm:$0xff]  ;;  %v1009_v2 = vld [vmem:[%s4222_s12 + $0x30] sm:$0xff] }
 0x328   :  { %v764_v37 = vpop.xlane.xlu0 %763  ;;  %2961 = vrsqrt.f32 %v817_v23  ;;  %v807_v25 = vsub.f32 %v3464_v42, %v3507_v33 }
 0x329   :  { %v819_v34 = vadd.f32 1e-05, %v803_v16  ;;  %v784_v20 = vmul.f32 0.03125, %v764_v37  ;;  %v789_v41 = vmul.f32 %v3505_v30, %v3505_v30  ;;  %v848_v7 = vmul.f32 %v2211_v12, %v834_v0 }
 0x32a   :  { %v758_v43 = vpop.xlane.xlu1 %757  ;;  %v805_v6 = vsub.f32 %v3476_v11, %v3505_v30 }
 0x32b   :  { %2963 = vrsqrt.f32 %v819_v34  ;;  %v800_v38 = vsub.f32 %v784_v20, %v792_v39  ;;  %v781_v45 = vmul.f32 0.03125, %v758_v43  ;;  %v862_v29 = vadd.f32 %v2212_v17, %v848_v7 }
 0x32c   :  { %v762_v48 = vpop.xlane.xlu0 %761  ;;  %v806_v34 = vsub.f32 %v3470_v44, %v3515_v14  ;;  %v54_v44 = vld [vmem:[%s4219_s1 + $0x8] sm:$0xff]  ;;  %v55_v14 = vld [vmem:[%s4219_s1 + $0x10] sm:$0xff] }
 0x32d   :  { %v816_v49 = vadd.f32 1e-05, %v800_v38  ;;  %v797_v50 = vsub.f32 %v781_v45, %v789_v41  ;;  %v783_v27 = vmul.f32 0.03125, %v762_v48  ;;  %v1018_v48 = vld [vmem:[%s4222_s12 + $0x78] sm:$0xff] }
 0x32f   :  { %2965 = vrsqrt.f32 %v816_v49  ;;  %v813_v52 = vadd.f32 1e-05, %v797_v50  ;;  %v799_v53 = vsub.f32 %v783_v27, %v791_v46  ;;  %v1017_v49 = vld [vmem:[%s4222_s12 + $0x70] sm:$0xff]  ;;  %v56_v50 = vld [vmem:[%s4219_s1 + $0x18] sm:$0xff]  ;;  %v1016_v27 = vld [vmem:[%s4222_s12 + $0x68] sm:$0xff] }
 0x330   :  { %v760_v56 = vpop.xlane.xlu0 %759 }
 0x331   :  { %v815_v59 = vadd.f32 1e-05, %v799_v53  ;;  %v782_v60 = vmul.f32 0.03125, %v760_v56  ;;  %2967 = vrsqrt.f32 %v813_v52  ;;  %v57_v52 = vld [vmem:[%s4219_s1 + $0x20] sm:$0xff]  ;;  %v58_v56 = vld [vmem:[%s4219_s1 + $0x28] sm:$0xff] }
 0x332   :  { %v1015_v53 = vld [vmem:[%s4222_s12 + $0x60] sm:$0xff] }
 0x333   :  { %2969 = vrsqrt.f32 %v815_v59  ;;  %v798_v63 = vsub.f32 %v782_v60, %v790_v57  ;;  %v1014_v57 = vld [vmem:[%s4222_s12 + $0x58] sm:$0xff]  ;;  %v59_v59 = vld [vmem:[%s4219_s1 + $0x30] sm:$0xff] }
 0x334   :  { %v2960_v1 = vpop.eup %2959  ;;  %v1013_v60 = vld [vmem:[%s4222_s12 + $0x50] sm:$0xff] }
 0x335   :  { %v814_v3 = vadd.f32 1e-05, %v798_v63  ;;  %v836_v4 = vmul.f32 %v2960_v1, %v812_v61  ;;  %v2962_v5 = vpop.eup %2961  ;;  %v1012_v61 = vld [vmem:[%s4222_s12 + $0x48] sm:$0xff]  ;;  %v1011_v63 = vld [vmem:[%s4222_s12 + $0x40] sm:$0xff]  ;;  %v1010_v1 = vld [vmem:[%s4222_s12 + $0x38] sm:$0xff] }
 0x336   :  { %v833_v18 = vmul.f32 %v2962_v5, %v809_v8  ;;  %v1006_v5 = vld [vmem:[%s4222_s12 + $0x18] sm:$0xff]  ;;  %v1005_v8 = vld [vmem:[%s4222_s12 + $0x10] sm:$0xff] }
 0x337   :  { %2971 = vrsqrt.f32 %v814_v3  ;;  %v850_v31 = vmul.f32 %v2211_v12, %v836_v4  ;;  %v1008_v3 = vld [vmem:[%s4222_s12 + $0x28] sm:$0xff]  ;;  %v1007_v4 = vld [vmem:[%s4222_s12 + $0x20] sm:$0xff] }
 0x338   :  { %v2964_v10 = vpop.eup %2963  ;;  %v847_v9 = vmul.f32 %v2211_v12, %v833_v18 }
 0x339   :  { %v864_v51 = vadd.f32 %v2212_v17, %v850_v31  ;;  %v835_v15 = vmul.f32 %v2964_v10, %v811_v13  ;;  %v1003_v13 = vld [vmem:[%s4222_s12] sm:$0xff]  ;;  %v2595_v31 = vpop.f32.mrf.mxu1 }
 0x33a   :  { %v861_v19 = vadd.f32 %v2212_v17, %v847_v9 }
 0x33b   :  { %2649 = vmatprep.subr.mxu1 %v864_v51  ;;  %v849_v62 = vmul.f32 %v2211_v12, %v835_v15  ;;  %v420_v0 = vpop.f32.mrf.mxu1 }
 0x33c   :  { %v2966_v21 = vpop.eup %2965  ;;  %2650 = vmatpush3.msra.mxu1 %v864_v51  ;;  %v2209_v51 = vld [vmem:[%s4223_s7] ss:$0 sm:$0xff] }
 0x33d   :  { %v863_v36 = vadd.f32 %v2212_v17, %v849_v62  ;;  %v832_v23 = vmul.f32 %v2966_v21, %v808_v22  ;;  %v2598_v10 = vpop.f32.mrf.mxu1  ;;  %v3619_v18 = vadd.f32 %v2209_v51, %v420_v0  ;;  %v3621_v22 = vadd.f32 %v2595_v31, %v2209_v51 }
 0x33e   :  { %v2968_v24 = vpop.eup %2967  ;;  %v3629_v9 = vadd.f32 %v2598_v10, %v2209_v51 }
 0x33f   :  { %2651 = vmatprep.subr.mxu1 %v863_v36  ;;  %v846_v16 = vmul.f32 %v2211_v12, %v832_v23  ;;  %v829_v41 = vmul.f32 %v2968_v24, %v805_v6  ;;  %v459_v7 = vmul.f32 %v3619_v18, %v3619_v18 }
 0x340   :  { %v2970_v37 = vpop.eup %2969  ;;  %2652 = vmatpush3.msra.mxu1 %v863_v36  ;;  %v460_v36 = vmul.f32 %v3621_v22, %v3621_v22 }
 0x341   :  { %2653 = vmatprep.subr.mxu1 %v862_v29  ;;  %v831_v39 = vmul.f32 %v2970_v37, %v807_v25  ;;  %v860_v20 = vadd.f32 %v2212_v17, %v846_v16  ;;  %v843_v11 = vmul.f32 %v2211_v12, %v829_v41  ;;  %v467_v24 = vmul.f32 %v459_v7, %v3619_v18 }
 0x342   :  { %2654 = vmatpush3.msra.mxu1 %v862_v29  ;;  %v468_v16 = vmul.f32 %v460_v36, %v3621_v22  ;;  %v462_v37 = vmul.f32 %v3629_v9, %v3629_v9 }
 0x343   :  { %2655 = vmatprep.subr.mxu1 %v861_v19  ;;  %v845_v43 = vmul.f32 %v2211_v12, %v831_v39  ;;  %v857_v46 = vadd.f32 %v2212_v17, %v843_v11  ;;  %v475_v39 = vmul.f32 0.044715, %v467_v24 }
 0x344   :  { %v2972_v42 = vpop.eup %2971  ;;  %2656 = vmatpush3.msra.mxu1 %v861_v19  ;;  %v476_v41 = vmul.f32 0.044715, %v468_v16 }
 0x345   :  { %2657 = vmatprep.subr.mxu1 %v860_v20  ;;  %v859_v33 = vadd.f32 %v2212_v17, %v845_v43  ;;  %v830_v38 = vmul.f32 %v2972_v42, %v806_v34  ;;  %v470_v42 = vmul.f32 %v462_v37, %v3629_v9 }
 0x346   :  { %2658 = vmatpush3.msra.mxu1 %v860_v20 }
 0x347   :  { %2659 = vmatprep.subr.mxu1 %v859_v33  ;;  %v844_v45 = vmul.f32 %v2211_v12, %v830_v38  ;;  %v1004_v12 = vld [vmem:[%s4222_s12 + $0x8] sm:$0xff] }
 0x348   :  { %2660 = vmatpush3.msra.mxu1 %v859_v33 }
 0x349   :  { %v858_v30 = vadd.f32 %v2212_v17, %v844_v45  ;;  %v430_v17 = vpop.f32.mrf.mxu1  ;;  %v483_v45 = vadd.f32 %v475_v39, %v3619_v18 }
 0x34a   :  { %v3625_v21 = vadd.f32 %v2209_v51, %v430_v17 }
 0x34b   :  { %2661 = vmatprep.subr.mxu1 %v858_v30  ;;  %v2601_v15 = vpop.f32.mrf.mxu1 }
 0x34c   :  { %2662 = vmatpush3.msra.mxu1 %v858_v30  ;;  %v461_v25 = vmul.f32 %v3625_v21, %v3625_v21  ;;  %v3639_v6 = vadd.f32 %v2601_v15, %v2209_v51 }
 0x34d   :  { %2663 = vmatprep.subr.mxu1 %v857_v46  ;;  %v440_v62 = vpop.f32.mrf.mxu1 }
 0x34e   :  { %2664 = vmatpush3.msra.mxu1 %v857_v46  ;;  %v3634_v29 = vadd.f32 %v2209_v51, %v440_v62  ;;  %v469_v34 = vmul.f32 %v461_v25, %v3625_v21  ;;  %v464_v33 = vmul.f32 %v3639_v6, %v3639_v6 }
 0x34f   :  { %2666 = vmatmul.mubr.msk.f32.vlgmr.msra.gmra.mxu1 %vm865_vm0, %v54_v44  ;;  %2677 = vmatprep.subr.mxu1 %v1018_v48  ;;  %v2604_v23 = vpop.f32.mrf.mxu1  ;;  %v484_v44 = vadd.f32 %v476_v41, %v3621_v22 }
 0x350   :  { %2668 = vmatprep.mubr.msk.f32.mxu1 %vm865_vm0, %v55_v14  ;;  %2678 = vmatpush3.msra.mxu1 %v1018_v48  ;;  %v463_v20 = vmul.f32 %v3634_v29, %v3634_v29  ;;  %v3649_v38 = vadd.f32 %v2604_v23, %v2209_v51  ;;  %v477_v11 = vmul.f32 0.044715, %v469_v34  ;;  %v478_v48 = vmul.f32 0.044715, %v470_v42 }
 0x351   :  { %2679 = vmatprep.subr.mxu1 %v1017_v49  ;;  %v450_v19 = vpop.f32.mrf.mxu1  ;;  %v472_v14 = vmul.f32 %v464_v33, %v3639_v6 }
 0x352   :  { %2680 = vmatpush3.msra.mxu1 %v1017_v49  ;;  %v3644_v43 = vadd.f32 %v2209_v51, %v450_v19  ;;  %v471_v30 = vmul.f32 %v463_v20, %v3634_v29  ;;  %v466_v49 = vmul.f32 %v3649_v38, %v3649_v38 }
 0x353   :  { %2669 = vmatmul.mubr.msk.f32.gmra.mxu1 %vm865_vm0, %v56_v50  ;;  %2681 = vmatprep.subr.mxu1 %v1016_v27  ;;  %v485_v50 = vadd.f32 %v477_v11, %v3625_v21 }
 0x354   :  { %2671 = vmatprep.mubr.msk.f32.mxu1 %vm865_vm0, %v57_v52  ;;  %2682 = vmatpush3.msra.mxu1 %v1016_v27  ;;  %v465_v46 = vmul.f32 %v3644_v43, %v3644_v43  ;;  %v479_v27 = vmul.f32 0.044715, %v471_v30 }
 0x355   :  { %2683 = vmatprep.subr.mxu1 %v1015_v53 }
 0x356   :  { %2684 = vmatpush3.msra.mxu1 %v1015_v53  ;;  %v473_v52 = vmul.f32 %v465_v46, %v3644_v43  ;;  %v491_v53 = vmul.f32 0.7978846, %v483_v45 }
 0x357   :  { %2672 = vmatmul.mubr.msk.f32.gmra.mxu1 %vm865_vm0, %v58_v56  ;;  %2685 = vmatprep.subr.mxu1 %v1014_v57  ;;  %v486_v56 = vadd.f32 %v478_v48, %v3629_v9 }
 0x358   :  { %2674 = vmatprep.mubr.msk.f32.mxu1 %vm865_vm0, %v59_v59  ;;  %2686 = vmatpush3.msra.mxu1 %v1014_v57  ;;  %v480_v57 = vmul.f32 0.044715, %v472_v14  ;;  %v474_v59 = vmul.f32 %v466_v49, %v3649_v38  ;;  %2973 = vtanh.f32 %v491_v53 }
 0x359   :  { %2687 = vmatprep.subr.mxu1 %v1013_v60 }
 0x35a   :  { %2688 = vmatpush3.msra.mxu1 %v1013_v60  ;;  %v492_v60 = vmul.f32 0.7978846, %v484_v44 }
 0x35b   :  { %2675 = vmatmul.mubr.msk.f32.gmra.mxu1 %vm865_vm0, %v60_v55  ;;  %2689 = vmatprep.subr.mxu1 %v1012_v61  ;;  %v487_v55 = vadd.f32 %v479_v27, %v3634_v29 }
 0x35c   :  { %2690 = vmatpush3.msra.mxu1 %v1012_v61  ;;  %v481_v61 = vmul.f32 0.044715, %v473_v52  ;;  %2975 = vtanh.f32 %v492_v60 }
 0x35d   :  { %2691 = vmatprep.subr.mxu1 %v1011_v63 }
 0x35e   :  { %2692 = vmatpush3.msra.mxu1 %v1011_v63  ;;  %v493_v63 = vmul.f32 0.7978846, %v485_v50 }
 0x35f   :  { %2693 = vmatprep.subr.mxu1 %v1010_v1 }
 0x360   :  { %2694 = vmatpush3.msra.mxu1 %v1010_v1  ;;  %v488_v1 = vadd.f32 %v480_v57, %v3639_v6  ;;  %2977 = vtanh.f32 %v493_v63 }
 0x361   :  { %2695 = vmatprep.subr.mxu1 %v1009_v2 }
 0x362   :  { %2696 = vmatpush3.msra.mxu1 %v1009_v2  ;;  %v482_v2 = vmul.f32 0.044715, %v474_v59 }
 0x363   :  { %2697 = vmatprep.subr.mxu1 %v1008_v3 }
 0x364   :  { %2698 = vmatpush3.msra.mxu1 %v1008_v3  ;;  %v494_v3 = vmul.f32 0.7978846, %v486_v56 }
 0x365   :  { %2699 = vmatprep.subr.mxu1 %v1007_v4  ;;  %v2974_v0 = vpop.eup %2973 }
 0x366   :  { %2700 = vmatpush3.msra.mxu1 %v1007_v4  ;;  %v489_v4 = vadd.f32 %v481_v61, %v3644_v43  ;;  %2979 = vtanh.f32 %v494_v3  ;;  %v507_v17 = vadd.f32 1.0, %v2974_v0 }
 0x367   :  { %2701 = vmatprep.subr.mxu1 %v1006_v5 }
 0x368   :  { %2702 = vmatpush3.msra.mxu1 %v1006_v5  ;;  %v495_v5 = vmul.f32 0.7978846, %v487_v55  ;;  %v515_v7 = vmul.f32 0.5, %v507_v17 }
 0x369   :  { %2703 = vmatprep.subr.mxu1 %v1005_v8  ;;  %v2976_v10 = vpop.eup %2975 }
 0x36a   :  { %2704 = vmatpush3.msra.mxu1 %v1005_v8  ;;  %v490_v8 = vadd.f32 %v482_v2, %v3649_v38  ;;  %2981 = vtanh.f32 %v495_v5  ;;  %v508_v15 = vadd.f32 1.0, %v2976_v10  ;;  %v523_v19 = vmul.f32 %v515_v7, %v3619_v18 }
 0x36b   :  { %2705 = vmatprep.subr.mxu1 %v1004_v12 }
 0x36c   :  { %2706 = vmatpush3.msra.mxu1 %v1004_v12  ;;  %v496_v12 = vmul.f32 0.7978846, %v488_v1  ;;  %v498_v31 = vmul.f32 0.7978846, %v490_v8  ;;  %v516_v24 = vmul.f32 0.5, %v508_v15 }
 0x36d   :  { %2707 = vmatprep.subr.mxu1 %v1003_v13  ;;  %v2978_v51 = vpop.eup %2977 }
 0x36e   :  { %2708 = vmatpush3.msra.mxu1 %v1003_v13  ;;  %v497_v13 = vmul.f32 0.7978846, %v489_v4  ;;  %2983 = vtanh.f32 %v496_v12  ;;  %v509_v36 = vadd.f32 1.0, %v2978_v51  ;;  %v524_v41 = vmul.f32 %v516_v24, %v3621_v22 }
 0x370   :  { %2985 = vtanh.f32 %v497_v13  ;;  %v517_v39 = vmul.f32 0.5, %v509_v36 }
 0x371   :  { %2987 = vtanh.f32 %v498_v31 }
 0x372   :  { %v525_v48 = vmul.f32 %v517_v39, %v3625_v21  ;;  %v2258_v39 = vld [vmem:[%s4215_s8 + $0xf0] sm:$0xff] }
 0x373   :  { %v2980_v62 = vpop.eup %2979 }
 0x374   :  { %v510_v25 = vadd.f32 1.0, %v2980_v62 }
 0x376   :  { %v518_v33 = vmul.f32 0.5, %v510_v25 }
 0x377   :  { %v2982_v23 = vpop.eup %2981 }
 0x378   :  { %v511_v34 = vadd.f32 1.0, %v2982_v23  ;;  %v526_v50 = vmul.f32 %v518_v33, %v3629_v9 }
 0x37a   :  { %v519_v14 = vmul.f32 0.5, %v511_v34 }
 0x37b   :  { %v2984_v16 = vpop.eup %2983 }
 0x37c   :  { %v512_v45 = vadd.f32 1.0, %v2984_v16  ;;  %v527_v57 = vmul.f32 %v519_v14, %v3634_v29  ;;  %v2221_v29 = vld [vmem:[%s4224_s13] ss:$0 sm:$0xff] }
 0x37d   :  { %v2986_v20 = vpop.eup %2985 }
 0x37e   :  { %v2988_v11 = vpop.eup %2987  ;;  %v513_v49 = vadd.f32 1.0, %v2986_v20  ;;  %v520_v27 = vmul.f32 0.5, %v512_v45  ;;  %v2257_v45 = vld [vmem:[%s4215_s8 + $0xe8] sm:$0xff] }
 0x37f   :  { %v514_v52 = vadd.f32 1.0, %v2988_v11 }
 0x380   :  { %v521_v59 = vmul.f32 0.5, %v513_v49  ;;  %v528_v60 = vmul.f32 %v520_v27, %v3639_v6  ;;  %v2254_v49 = vld [vmem:[%s4215_s8 + $0xd0] sm:$0xff]  ;;  %v2253_v27 = vld [vmem:[%s4215_s8 + $0xc8] sm:$0xff] }
 0x381   :  { %v522_v21 = vmul.f32 0.5, %v514_v52  ;;  %v2234_v52 = vld [vmem:[%s4214_s6 + $0xc0] sm:$0xff] }
 0x382   :  { %v529_v9 = vmul.f32 %v521_v59, %v3644_v43  ;;  %v2250_v59 = vld [vmem:[%s4215_s8 + $0xb0] sm:$0xff] }
 0x383   :  { %v530_v2 = vmul.f32 %v522_v21, %v3649_v38  ;;  %v2230_v21 = vld [vmem:[%s4214_s6 + $0xa0] sm:$0xff] }
 0x40f   :  { %v2667_v37 = vpop.f32.mrf.mxu1 }
 0x410   :  { %v996_v46 = vmul.f32 %v2667_v37, %v524_v41 }
 0x411   :  { %v956_v42 = vpop.f32.mrf.mxu1 }
 0x412   :  { %v995_v30 = vmul.f32 %v956_v42, %v523_v19  ;;  %v2240_v19 = vld [vmem:[%s4214_s6 + $0xf0] sm:$0xff] }
 0x413   :  { %v2670_v44 = vpop.f32.mrf.mxu1 }
 0x414   :  { %2709 = vmatprep.mubr.f32.mxu1 %v995_v30  ;;  %v998_v22 = vmul.f32 %v2670_v44, %v526_v50  ;;  %v2238_v30 = vld [vmem:[%s4214_s6 + $0xe0] sm:$0xff]  ;;  %v2237_v44 = vld [vmem:[%s4214_s6 + $0xd8] sm:$0xff] }
 0x415   :  { %v966_v18 = vpop.f32.mrf.mxu1  ;;  %2710 = vmatmul.mubr.f32.vlgmr.msra.gmra.mxu1 %v996_v46  ;;  %v2256_v46 = vld [vmem:[%s4215_s8 + $0xe0] sm:$0xff] }
 0x416   :  { %v997_v53 = vmul.f32 %v966_v18, %v525_v48  ;;  %v2235_v18 = vld [vmem:[%s4214_s6 + $0xc8] sm:$0xff] }
 0x417   :  { %v2673_v56 = vpop.f32.mrf.mxu1 }
 0x418   :  { %2712 = vmatprep.mubr.f32.mxu1 %v997_v53  ;;  %v1000_v63 = vmul.f32 %v2673_v56, %v528_v60  ;;  %v2252_v53 = vld [vmem:[%s4215_s8 + $0xc0] sm:$0xff]  ;;  %v2251_v56 = vld [vmem:[%s4215_s8 + $0xb8] sm:$0xff]  ;;  %v2231_v60 = vld [vmem:[%s4214_s6 + $0xa8] sm:$0xff] }
 0x419   :  { %v976_v55 = vpop.f32.mrf.mxu1  ;;  %2713 = vmatmul.mubr.f32.gmra.mxu1 %v998_v22  ;;  %v2233_v22 = vld [vmem:[%s4214_s6 + $0xb8] sm:$0xff] }
 0x41a   :  { %v999_v61 = vmul.f32 %v976_v55, %v527_v57  ;;  %v2232_v57 = vld [vmem:[%s4214_s6 + $0xb0] sm:$0xff]  ;;  %v2249_v55 = vld [vmem:[%s4215_s8 + $0xa8] sm:$0xff] }
 0x41b   :  { %v2676_v1 = vpop.f32.mrf.mxu1 }
 0x41c   :  { %2715 = vmatprep.mubr.f32.mxu1 %v999_v61  ;;  %v1002_v5 = vmul.f32 %v2676_v1, %v530_v2  ;;  %v2248_v61 = vld [vmem:[%s4215_s8 + $0xa0] sm:$0xff]  ;;  %v2247_v1 = vld [vmem:[%s4215_s8 + $0x98] sm:$0xff]  ;;  %v2246_v2 = vld [vmem:[%s4215_s8 + $0x90] sm:$0xff] }
 0x41d   :  { %v986_v3 = vpop.f32.mrf.mxu1  ;;  %2716 = vmatmul.mubr.f32.gmra.mxu1 %v1000_v63  ;;  %v2229_v63 = vld [vmem:[%s4214_s6 + $0x98] sm:$0xff] }
 0x41e   :  { %v1001_v4 = vmul.f32 %v986_v3, %v529_v9  ;;  %v2228_v9 = vld [vmem:[%s4214_s6 + $0x90] sm:$0xff]  ;;  %v2227_v3 = vld [vmem:[%s4214_s6 + $0x88] sm:$0xff] }
 0x420   :  { %2718 = vmatprep.mubr.f32.mxu1 %v1001_v4  ;;  %v2245_v4 = vld [vmem:[%s4215_s8 + $0x88] sm:$0xff] }
 0x421   :  { %2719 = vmatmul.mubr.f32.gmra.mxu1 %v1002_v5  ;;  %v2226_v5 = vld [vmem:[%s4214_s6 + $0x80] sm:$0xff] }
 0x4d5   :  { %v2711_v6 = vpop.f32.mrf.mxu1 }
 0x4d6   :  { %v1098_v8 = vadd.f32 %v2711_v6, %v2221_v29 }
 0x4d7   :  { %v1092_v12 = vpop.f32.mrf.mxu1 }
 0x4d8   :  { %v3679_v13 = vadd.f32 %v1098_v8, %v3224_v26  ;;  %v1093_v31 = vadd.f32 %v2221_v29, %v1092_v12 }
 0x4d9   :  { %v2714_v43 = vpop.f32.mrf.mxu1 }
 0x4da   :  { %v3682_v38 = vadd.f32 %v1093_v31, %v3227_v28  ;;  %1145 = vadd.xlane.f32.xlu1 %v3679_v13  ;;  %v1108_v10 = vadd.f32 %v2714_v43, %v2221_v29  ;;  %v1160_v17 = vmul.f32 %v3679_v13, %v3679_v13 }
 0x4db   :  { %v1102_v0 = vpop.f32.mrf.mxu1 }
 0x4dc   :  { %1143 = vadd.xlane.f32.xlu0 %v3682_v38  ;;  %v1103_v51 = vadd.f32 %v2221_v29, %v1102_v0  ;;  %v1159_v26 = vmul.f32 %v3682_v38, %v3682_v38  ;;  %v3691_v62 = vadd.f32 %v1108_v10, %v3239_v35  ;;  %v2241_v35 = vld [vmem:[%s4214_s6 + $0xf8] sm:$0xff] }
 0x4dd   :  { %v2717_v15 = vpop.f32.mrf.mxu1  ;;  %2721 = vmatprep.subr.mxu0 %v2241_v35 }
 0x4de   :  { %1169 = vadd.xlane.f32.xlu1 %v1160_v17  ;;  %v3694_v28 = vadd.f32 %v1103_v51, %v3233_v32  ;;  %v1118_v36 = vadd.f32 %v2717_v15, %v2221_v29  ;;  %v1162_v23 = vmul.f32 %v3691_v62, %v3691_v62  ;;  %v2259_v32 = vld [vmem:[%s4215_s8 + $0xf8] sm:$0xff]  ;;  %2722 = vmatpush3.msra.mxu0 %v2241_v35 }
 0x4df   :  { %v1112_v7 = vpop.f32.mrf.mxu1  ;;  %2765 = vmatprep.subr.mxu1 %v2259_v32  ;;  %2723 = vmatprep.subr.mxu0 %v2240_v19 }
 0x4e0   :  { %1167 = vadd.xlane.f32.xlu0 %v1159_v26  ;;  %v1113_v24 = vadd.f32 %v2221_v29, %v1112_v7  ;;  %v1161_v25 = vmul.f32 %v3694_v28, %v3694_v28  ;;  %v3709_v37 = vadd.f32 %v1118_v36, %v3269_v47  ;;  %2766 = vmatpush3.msra.mxu1 %v2259_v32 }
 0x4e1   :  { %v2720_v16 = vpop.f32.mrf.mxu1  ;;  %2767 = vmatprep.subr.mxu1 %v2258_v39  ;;  %2724 = vmatpush3.msra.mxu0 %v2240_v19 }
 0x4e2   :  { %1149 = vadd.xlane.f32.xlu1 %v3691_v62  ;;  %v3718_v34 = vadd.f32 %v1113_v24, %v3252_v40  ;;  %2768 = vmatpush3.msra.mxu1 %v2258_v39  ;;  %v1128_v20 = vadd.f32 %v2720_v16, %v2221_v29  ;;  %v1164_v41 = vmul.f32 %v3709_v37, %v3709_v37  ;;  %v2239_v40 = vld [vmem:[%s4214_s6 + $0xe8] sm:$0xff] }
 0x4e3   :  { %v1122_v47 = vpop.f32.mrf.mxu1  ;;  %2725 = vmatprep.subr.mxu0 %v2239_v40  ;;  %2769 = vmatprep.subr.mxu1 %v2257_v45 }
 0x4e4   :  { %1147 = vadd.xlane.f32.xlu0 %v3694_v28  ;;  %v1123_v42 = vadd.f32 %v2221_v29, %v1122_v47  ;;  %v1163_v33 = vmul.f32 %v3718_v34, %v3718_v34  ;;  %v3733_v11 = vadd.f32 %v1128_v20, %v3299_v58  ;;  %2726 = vmatpush3.msra.mxu0 %v2239_v40  ;;  %v2255_v58 = vld [vmem:[%s4215_s8 + $0xd8] sm:$0xff]  ;;  %v2244_v29 = vld [vmem:[%s4215_s8 + $0x80] sm:$0xff] }
 0x4e5   :  { %2770 = vmatpush3.msra.mxu1 %v2257_v45  ;;  %2727 = vmatprep.subr.mxu0 %v2238_v30 }
 0x4e6   :  { %1173 = vadd.xlane.f32.xlu1 %v1162_v23  ;;  %v3745_v48 = vadd.f32 %v1123_v42, %v3288_v54  ;;  %2771 = vmatprep.subr.mxu1 %v2256_v46  ;;  %v1166_v14 = vmul.f32 %v3733_v11, %v3733_v11  ;;  %v2236_v54 = vld [vmem:[%s4214_s6 + $0xd0] sm:$0xff] }
 0x4e7   :  { %2728 = vmatpush3.msra.mxu0 %v2238_v30  ;;  %2772 = vmatpush3.msra.mxu1 %v2256_v46 }
 0x4e8   :  { %1171 = vadd.xlane.f32.xlu0 %v1161_v25  ;;  %2729 = vmatprep.subr.mxu0 %v2237_v44  ;;  %v1165_v50 = vmul.f32 %v3745_v48, %v3745_v48 }
 0x4e9   :  { %2773 = vmatprep.subr.mxu1 %v2255_v58  ;;  %2730 = vmatpush3.msra.mxu0 %v2237_v44 }
 0x4ea   :  { %1153 = vadd.xlane.f32.xlu1 %v3709_v37  ;;  %2774 = vmatpush3.msra.mxu1 %v2255_v58 }
 0x4eb   :  { %2731 = vmatprep.subr.mxu0 %v2236_v54  ;;  %2775 = vmatprep.subr.mxu1 %v2254_v49 }
 0x4ec   :  { %1151 = vadd.xlane.f32.xlu0 %v3718_v34  ;;  %2732 = vmatpush3.msra.mxu0 %v2236_v54 }
 0x4ed   :  { %2776 = vmatpush3.msra.mxu1 %v2254_v49  ;;  %2733 = vmatprep.subr.mxu0 %v2235_v18 }
 0x4ee   :  { %1177 = vadd.xlane.f32.xlu1 %v1164_v41  ;;  %2777 = vmatprep.subr.mxu1 %v2253_v27 }
 0x4ef   :  { %2734 = vmatpush3.msra.mxu0 %v2235_v18  ;;  %2778 = vmatpush3.msra.mxu1 %v2253_v27 }
 0x4f0   :  { %1175 = vadd.xlane.f32.xlu0 %v1163_v33  ;;  %2735 = vmatprep.subr.mxu0 %v2234_v52 }
 0x4f1   :  { %2779 = vmatprep.subr.mxu1 %v2252_v53  ;;  %2736 = vmatpush3.msra.mxu0 %v2234_v52 }
 0x4f2   :  { %1157 = vadd.xlane.f32.xlu1 %v3733_v11  ;;  %2780 = vmatpush3.msra.mxu1 %v2252_v53 }
 0x4f3   :  { %2737 = vmatprep.subr.mxu0 %v2233_v22  ;;  %2781 = vmatprep.subr.mxu1 %v2251_v56 }
 0x4f4   :  { %1155 = vadd.xlane.f32.xlu0 %v3745_v48  ;;  %2738 = vmatpush3.msra.mxu0 %v2233_v22 }
 0x4f5   :  { %2782 = vmatpush3.msra.mxu1 %v2251_v56  ;;  %2739 = vmatprep.subr.mxu0 %v2232_v57 }
 0x4f6   :  { %1181 = vadd.xlane.f32.xlu1 %v1166_v14  ;;  %2783 = vmatprep.subr.mxu1 %v2250_v59 }
 0x4f7   :  { %2740 = vmatpush3.msra.mxu0 %v2232_v57  ;;  %2784 = vmatpush3.msra.mxu1 %v2250_v59  ;;  %v3842_v57 = vld [vmem:[%s4216_s4 + $0x1] ss:$0 sm:$0xff] }
 0x4f8   :  { %1179 = vadd.xlane.f32.xlu0 %v1165_v50  ;;  %2741 = vmatprep.subr.mxu0 %v2231_v60 }
 0x4f9   :  { %2785 = vmatprep.subr.mxu1 %v2249_v55  ;;  %2742 = vmatpush3.msra.mxu0 %v2231_v60 }
 0x4fa   :  { %2786 = vmatpush3.msra.mxu1 %v2249_v55  ;;  %2743 = vmatprep.subr.mxu0 %v2230_v21 }
 0x4fb   :  { %2787 = vmatprep.subr.mxu1 %v2248_v61  ;;  %2744 = vmatpush3.msra.mxu0 %v2230_v21 }
 0x4fc   :  { %2788 = vmatpush3.msra.mxu1 %v2248_v61  ;;  %2745 = vmatprep.subr.mxu0 %v2229_v63 }
 0x4fd   :  { %2789 = vmatprep.subr.mxu1 %v2247_v1  ;;  %2746 = vmatpush3.msra.mxu0 %v2229_v63 }
 0x4fe   :  { %2790 = vmatpush3.msra.mxu1 %v2247_v1  ;;  %2747 = vmatprep.subr.mxu0 %v2228_v9 }
 0x4ff   :  { %2791 = vmatprep.subr.mxu1 %v2246_v2  ;;  %2748 = vmatpush3.msra.mxu0 %v2228_v9  ;;  %v3848_v9 = vld [vmem:[%s4217_s5 + $0x1] ss:$0 sm:$0xff] }
 0x500   :  { %2792 = vmatpush3.msra.mxu1 %v2246_v2  ;;  %2749 = vmatprep.subr.mxu0 %v2227_v3 }
 0x501   :  { %2793 = vmatprep.subr.mxu1 %v2245_v4  ;;  %2750 = vmatpush3.msra.mxu0 %v2227_v3 }
 0x502   :  { %2794 = vmatpush3.msra.mxu1 %v2245_v4  ;;  %2751 = vmatprep.subr.mxu0 %v2226_v5 }
 0x503   :  { %2795 = vmatprep.subr.mxu1 %v2244_v29  ;;  %2752 = vmatpush3.msra.mxu0 %v2226_v5 }
 0x504   :  { %2796 = vmatpush3.msra.mxu1 %v2244_v29 }
 0x563   :  { %v1146_v6 = vpop.xlane.xlu1 %1145 }
 0x564   :  { %v1184_v8 = vmul.f32 0.03125, %v1146_v6 }
 0x565   :  { %v1144_v12 = vpop.xlane.xlu0 %1143 }
 0x566   :  { %v1183_v31 = vmul.f32 0.03125, %v1144_v12  ;;  %v1200_v0 = vmul.f32 %v1184_v8, %v1184_v8  ;;  %v1216_v18 = vsub.f32 %v3679_v13, %v1184_v8 }
 0x567   :  { %v1170_v43 = vpop.xlane.xlu1 %1169 }
 0x568   :  { %v1192_v10 = vmul.f32 0.03125, %v1170_v43  ;;  %v1199_v51 = vmul.f32 %v1183_v31, %v1183_v31  ;;  %v1215_v63 = vsub.f32 %v3682_v38, %v1183_v31 }
 0x569   :  { %v1168_v17 = vpop.xlane.xlu0 %1167 }
 0x56a   :  { %v1208_v26 = vsub.f32 %v1192_v10, %v1200_v0  ;;  %v1191_v15 = vmul.f32 0.03125, %v1168_v17 }
 0x56b   :  { %v1150_v7 = vpop.xlane.xlu1 %1149 }
 0x56c   :  { %v1224_v36 = vadd.f32 1e-05, %v1208_v26  ;;  %v1207_v23 = vsub.f32 %v1191_v15, %v1199_v51  ;;  %v3822_v24 = vmul.f32 0.03125, %v1150_v7 }
 0x56d   :  { %v1148_v25 = vpop.xlane.xlu0 %1147 }
 0x56e   :  { %2989 = vrsqrt.f32 %v1224_v36  ;;  %v1223_v35 = vadd.f32 1e-05, %v1207_v23  ;;  %v3824_v32 = vmul.f32 0.03125, %v1148_v25  ;;  %v1202_v19 = vmul.f32 %v3822_v24, %v3822_v24 }
 0x56f   :  { %v1174_v16 = vpop.xlane.xlu1 %1173  ;;  %v1218_v0 = vsub.f32 %v3691_v62, %v3822_v24 }
 0x570   :  { %2991 = vrsqrt.f32 %v1223_v35  ;;  %v1194_v39 = vmul.f32 0.03125, %v1174_v16  ;;  %v1201_v20 = vmul.f32 %v3824_v32, %v3824_v32  ;;  %v1217_v7 = vsub.f32 %v3694_v28, %v3824_v32 }
 0x571   :  { %v1172_v47 = vpop.xlane.xlu0 %1171 }
 0x572   :  { %v1210_v41 = vsub.f32 %v1194_v39, %v1202_v19  ;;  %v1193_v42 = vmul.f32 0.03125, %v1172_v47 }
 0x573   :  { %v1154_v33 = vpop.xlane.xlu1 %1153 }
 0x574   :  { %v1226_v40 = vadd.f32 1e-05, %v1210_v41  ;;  %v1209_v45 = vsub.f32 %v1193_v42, %v1201_v20  ;;  %v3830_v30 = vmul.f32 0.03125, %v1154_v33 }
 0x575   :  { %v1152_v46 = vpop.xlane.xlu0 %1151 }
 0x576   :  { %2993 = vrsqrt.f32 %v1226_v40  ;;  %v1225_v44 = vadd.f32 1e-05, %v1209_v45  ;;  %v3832_v58 = vmul.f32 0.03125, %v1152_v46  ;;  %v1204_v54 = vmul.f32 %v3830_v30, %v3830_v30 }
 0x577   :  { %v1178_v14 = vpop.xlane.xlu1 %1177  ;;  %v1220_v32 = vsub.f32 %v3709_v37, %v3830_v30 }
 0x578   :  { %2995 = vrsqrt.f32 %v1225_v44  ;;  %v1196_v49 = vmul.f32 0.03125, %v1178_v14  ;;  %v1203_v27 = vmul.f32 %v3832_v58, %v3832_v58  ;;  %v1219_v42 = vsub.f32 %v3718_v34, %v3832_v58 }
 0x579   :  { %v1176_v50 = vpop.xlane.xlu0 %1175 }
 0x57a   :  { %v1212_v52 = vsub.f32 %v1196_v49, %v1204_v54  ;;  %v1195_v53 = vmul.f32 0.03125, %v1176_v50 }
 0x57b   :  { %v2990_v22 = vpop.eup %2989  ;;  %v1158_v56 = vpop.xlane.xlu1 %1157 }
 0x57c   :  { %v1228_v59 = vadd.f32 1e-05, %v1212_v52  ;;  %v1211_v60 = vsub.f32 %v1195_v53, %v1203_v27  ;;  %v1190_v55 = vmul.f32 0.03125, %v1158_v56  ;;  %v1240_v21 = vmul.f32 %v2990_v22, %v1216_v18 }
 0x57d   :  { %v2992_v61 = vpop.eup %2991  ;;  %v1156_v1 = vpop.xlane.xlu0 %1155 }
 0x57e   :  { %2997 = vrsqrt.f32 %v1228_v59  ;;  %v1227_v2 = vadd.f32 1e-05, %v1211_v60  ;;  %v1189_v3 = vmul.f32 0.03125, %v1156_v1  ;;  %v1239_v5 = vmul.f32 %v2992_v61, %v1215_v63  ;;  %v3053_v59 = vld [vmem:[%s4219_s1] sm:$0xff] }
 0x57f   :  { %v1182_v4 = vpop.xlane.xlu1 %1181  ;;  %v1254_v29 = vmul.f32 %v3842_v57, %v1240_v21  ;;  %v1206_v6 = vmul.f32 %v1190_v55, %v1190_v55  ;;  %v1222_v30 = vsub.f32 %v3733_v11, %v1190_v55 }
 0x580   :  { %2999 = vrsqrt.f32 %v1227_v2  ;;  %v1198_v8 = vmul.f32 0.03125, %v1182_v4  ;;  %v1253_v43 = vmul.f32 %v3842_v57, %v1239_v5  ;;  %v1205_v10 = vmul.f32 %v1189_v3, %v1189_v3 }
 0x581   :  { %v1180_v12 = vpop.xlane.xlu0 %1179  ;;  %v1268_v31 = vadd.f32 %v3848_v9, %v1254_v29  ;;  %v1221_v58 = vsub.f32 %v3745_v48, %v1189_v3 }
 0x582   :  { %v1214_v17 = vsub.f32 %v1198_v8, %v1206_v6  ;;  %v1197_v51 = vmul.f32 0.03125, %v1180_v12  ;;  %v1267_v15 = vadd.f32 %v3848_v9, %v1253_v43 }
 0x583   :  { %v2994_v26 = vpop.eup %2993 }
 0x584   :  { %v1230_v36 = vadd.f32 1e-05, %v1214_v17  ;;  %v1213_v23 = vsub.f32 %v1197_v51, %v1205_v10  ;;  %v1242_v25 = vmul.f32 %v2994_v26, %v1218_v0  ;;  %2753 = vmatprep.mubr.f32.mxu0 %v1267_v15  ;;  %2797 = vmatprep.mubr.f32.mxu1 %v1267_v15 }
 0x585   :  { %v2996_v35 = vpop.eup %2995  ;;  %2754 = vmatmul.mubr.f32.vlgmr.msra.gmra.mxu0 %v1268_v31  ;;  %2798 = vmatmul.mubr.f32.vlgmr.msra.gmra.mxu1 %v1268_v31 }
 0x586   :  { %3001 = vrsqrt.f32 %v1230_v36  ;;  %v1229_v16 = vadd.f32 1e-05, %v1213_v23  ;;  %v1241_v24 = vmul.f32 %v2996_v35, %v1217_v7  ;;  %v1256_v19 = vmul.f32 %v3842_v57, %v1242_v25 }
 0x588   :  { %3003 = vrsqrt.f32 %v1229_v16  ;;  %v1255_v39 = vmul.f32 %v3842_v57, %v1241_v24  ;;  %v1270_v47 = vadd.f32 %v3848_v9, %v1256_v19 }
 0x58a   :  { %v1269_v20 = vadd.f32 %v3848_v9, %v1255_v39 }
 0x58b   :  { %v2998_v41 = vpop.eup %2997 }
 0x58c   :  { %2756 = vmatprep.mubr.f32.mxu0 %v1269_v20  ;;  %2800 = vmatprep.mubr.f32.mxu1 %v1269_v20  ;;  %v1244_v33 = vmul.f32 %v2998_v41, %v1220_v32 }
 0x58d   :  { %v3000_v40 = vpop.eup %2999  ;;  %2757 = vmatmul.mubr.f32.gmra.mxu0 %v1270_v47  ;;  %2801 = vmatmul.mubr.f32.gmra.mxu1 %v1270_v47 }
 0x58e   :  { %v1243_v45 = vmul.f32 %v3000_v40, %v1219_v42  ;;  %v1258_v46 = vmul.f32 %v3842_v57, %v1244_v33 }
 0x590   :  { %v1257_v44 = vmul.f32 %v3842_v57, %v1243_v45  ;;  %v1272_v14 = vadd.f32 %v3848_v9, %v1258_v46 }
 0x592   :  { %v1271_v54 = vadd.f32 %v3848_v9, %v1257_v44 }
 0x593   :  { %v3002_v49 = vpop.eup %3001 }
 0x594   :  { %2759 = vmatprep.mubr.f32.mxu0 %v1271_v54  ;;  %2803 = vmatprep.mubr.f32.mxu1 %v1271_v54  ;;  %v1246_v50 = vmul.f32 %v3002_v49, %v1222_v30 }
 0x595   :  { %v3004_v18 = vpop.eup %3003  ;;  %2760 = vmatmul.mubr.f32.gmra.mxu0 %v1272_v14  ;;  %2804 = vmatmul.mubr.f32.gmra.mxu1 %v1272_v14 }
 0x596   :  { %v1245_v27 = vmul.f32 %v3004_v18, %v1221_v58  ;;  %v1260_v52 = vmul.f32 %v3842_v57, %v1246_v50 }
 0x598   :  { %v1259_v53 = vmul.f32 %v3842_v57, %v1245_v27  ;;  %v1274_v22 = vadd.f32 %v3848_v9, %v1260_v52  ;;  %v2261_v57 = vld [vmem:[%s4218_s9 + $0x1] ss:$0 sm:$0xff] }
 0x59a   :  { %v1273_v56 = vadd.f32 %v3848_v9, %v1259_v53 }
 0x59c   :  { %2762 = vmatprep.mubr.f32.mxu0 %v1273_v56  ;;  %2806 = vmatprep.mubr.f32.mxu1 %v1273_v56 }
 0x59d   :  { %2763 = vmatmul.mubr.f32.gmra.mxu0 %v1274_v22  ;;  %2807 = vmatmul.mubr.f32.gmra.mxu1 %v1274_v22 }
 0x59e   :  { %2825 = vmatprep.mubr.msk.f32.mxu0 %vm865_vm0, %v3053_v59 }
 0x645   :  { %v2799_v60 = vpop.f32.mrf.mxu1 }
 0x646   :  { %v3885_v5 = vadd.f32 %v2799_v60, %v2261_v57 }
 0x647   :  { %v1568_v55 = vpop.f32.mrf.mxu1 }
 0x648   :  { %v1608_v10 = vmul.f32 %v3885_v5, %v3885_v5  ;;  %v3893_v17 = vadd.f32 %v2261_v57, %v1568_v55 }
 0x64a   :  { %v1616_v25 = vmul.f32 %v1608_v10, %v3885_v5  ;;  %v1607_v35 = vmul.f32 %v3893_v17, %v3893_v17 }
 0x64c   :  { %v1624_v33 = vmul.f32 0.044715, %v1616_v25  ;;  %v1615_v40 = vmul.f32 %v1607_v35, %v3893_v17 }
 0x64d   :  { %v2802_v21 = vpop.f32.mrf.mxu1 }
 0x64e   :  { %v1584_v61 = vadd.f32 %v2802_v21, %v2261_v57  ;;  %v1632_v50 = vadd.f32 %v1624_v33, %v3885_v5  ;;  %v1623_v18 = vmul.f32 0.044715, %v1615_v40 }
 0x64f   :  { %v1578_v1 = vpop.f32.mrf.mxu1 }
 0x650   :  { %v1610_v63 = vmul.f32 %v1584_v61, %v1584_v61  ;;  %v3883_v2 = vadd.f32 %v2261_v57, %v1578_v1  ;;  %v1640_v60 = vmul.f32 0.7978846, %v1632_v50  ;;  %v1631_v55 = vadd.f32 %v1623_v18, %v3893_v17 }
 0x652   :  { %v1618_v9 = vmul.f32 %v1610_v63, %v1584_v61  ;;  %v1609_v6 = vmul.f32 %v3883_v2, %v3883_v2  ;;  %v1639_v63 = vmul.f32 0.7978846, %v1631_v55 }
 0x654   :  { %v1626_v3 = vmul.f32 0.044715, %v1618_v9  ;;  %v1617_v51 = vmul.f32 %v1609_v6, %v3883_v2 }
 0x655   :  { %v2805_v4 = vpop.f32.mrf.mxu1 }
 0x656   :  { %v1634_v29 = vadd.f32 %v1626_v3, %v1584_v61  ;;  %v1594_v8 = vadd.f32 %v2805_v4, %v2261_v57  ;;  %v1625_v24 = vmul.f32 0.044715, %v1617_v51 }
 0x657   :  { %v1588_v12 = vpop.f32.mrf.mxu1 }
 0x658   :  { %v1642_v43 = vmul.f32 0.7978846, %v1634_v29  ;;  %v1612_v31 = vmul.f32 %v1594_v8, %v1594_v8  ;;  %v3889_v0 = vadd.f32 %v2261_v57, %v1588_v12  ;;  %v1633_v46 = vadd.f32 %v1625_v24, %v3883_v2 }
 0x65a   :  { %3005 = vtanh.f32 %v1642_v43  ;;  %v1620_v26 = vmul.f32 %v1612_v31, %v1594_v8  ;;  %v1611_v15 = vmul.f32 %v3889_v0, %v3889_v0  ;;  %v1641_v27 = vmul.f32 0.7978846, %v1633_v46 }
 0x65c   :  { %v1628_v7 = vmul.f32 0.044715, %v1620_v26  ;;  %v1619_v36 = vmul.f32 %v1611_v15, %v3889_v0 }
 0x65d   :  { %v2808_v23 = vpop.f32.mrf.mxu1 }
 0x65e   :  { %v1604_v16 = vadd.f32 %v2808_v23, %v2261_v57  ;;  %v1636_v19 = vadd.f32 %v1628_v7, %v1594_v8  ;;  %v1627_v39 = vmul.f32 0.044715, %v1619_v36 }
 0x65f   :  { %v1598_v47 = vpop.f32.mrf.mxu1 }
 0x660   :  { %v1614_v32 = vmul.f32 %v1604_v16, %v1604_v16  ;;  %v1644_v20 = vmul.f32 0.7978846, %v1636_v19  ;;  %v1635_v41 = vadd.f32 %v1627_v39, %v3889_v0  ;;  %v1599_v42 = vadd.f32 %v2261_v57, %v1598_v47 }
 0x662   :  { %v1622_v45 = vmul.f32 %v1614_v32, %v1604_v16  ;;  %3007 = vtanh.f32 %v1644_v20  ;;  %v1643_v44 = vmul.f32 0.7978846, %v1635_v41  ;;  %v1613_v14 = vmul.f32 %v1599_v42, %v1599_v42 }
 0x664   :  { %v1630_v30 = vmul.f32 0.044715, %v1622_v45  ;;  %3009 = vtanh.f32 %v1643_v44  ;;  %v1621_v54 = vmul.f32 %v1613_v14, %v1599_v42 }
 0x666   :  { %v1638_v49 = vadd.f32 %v1630_v30, %v1604_v16  ;;  %v1629_v52 = vmul.f32 0.044715, %v1621_v54 }
 0x667   :  { %v3006_v58 = vpop.eup %3005 }
 0x668   :  { %v1646_v53 = vmul.f32 0.7978846, %v1638_v49  ;;  %v1658_v22 = vadd.f32 1.0, %v3006_v58  ;;  %v1637_v56 = vadd.f32 %v1629_v52, %v1599_v42 }
 0x66a   :  { %3011 = vtanh.f32 %v1646_v53  ;;  %v1666_v59 = vmul.f32 0.5, %v1658_v22  ;;  %v1645_v57 = vmul.f32 0.7978846, %v1637_v56 }
 0x66b   :  { %3013 = vtanh.f32 %v1641_v27 }
 0x66c   :  { %v3907_v21 = vmul.f32 %v1666_v59, %v1584_v61  ;;  %3015 = vtanh.f32 %v1645_v57 }
 0x66d   :  { %3017 = vtanh.f32 %v1640_v60 }
 0x66e   :  { %1689 = vadd.xlane.f32.xlu1 %v3907_v21  ;;  %3019 = vtanh.f32 %v1639_v63  ;;  %v1702_v40 = vmul.f32 %v3907_v21, %v3907_v21 }
 0x66f   :  { %v3008_v1 = vpop.eup %3007 }
 0x670   :  { %v1660_v9 = vadd.f32 1.0, %v3008_v1 }
 0x671   :  { %v3010_v3 = vpop.eup %3009 }
 0x672   :  { %v1668_v4 = vmul.f32 0.5, %v1660_v9  ;;  %v1659_v29 = vadd.f32 1.0, %v3010_v3 }
 0x674   :  { %v3910_v6 = vmul.f32 %v1668_v4, %v1594_v8  ;;  %v1667_v12 = vmul.f32 0.5, %v1659_v29 }
 0x676   :  { %1693 = vadd.xlane.f32.xlu1 %v3910_v6  ;;  %v1704_v61 = vmul.f32 %v3910_v6, %v3910_v6  ;;  %v3916_v51 = vmul.f32 %v1667_v12, %v3889_v0 }
 0x677   :  { %v3012_v43 = vpop.eup %3011 }
 0x678   :  { %v3014_v31 = vpop.eup %3013  ;;  %v1662_v10 = vadd.f32 1.0, %v3012_v43  ;;  %1717 = vadd.xlane.f32.xlu0 %v1704_v61  ;;  %v1703_v0 = vmul.f32 %v3916_v51, %v3916_v51 }
 0x679   :  { %v3016_v26 = vpop.eup %3015  ;;  %v1657_v8 = vadd.f32 1.0, %v3014_v31 }
 0x67a   :  { %v1670_v15 = vmul.f32 0.5, %v1662_v10  ;;  %1691 = vadd.xlane.f32.xlu1 %v3916_v51  ;;  %v1661_v7 = vadd.f32 1.0, %v3016_v26  ;;  %v3018_v36 = vpop.eup %3017 }
 0x67b   :  { %v1665_v24 = vmul.f32 0.5, %v1657_v8  ;;  %v1656_v19 = vadd.f32 1.0, %v3018_v36  ;;  %v3020_v39 = vpop.eup %3019 }
 0x67c   :  { %v3919_v23 = vmul.f32 %v1670_v15, %v1604_v16  ;;  %v1669_v25 = vmul.f32 0.5, %v1661_v7  ;;  %v1655_v16 = vadd.f32 1.0, %v3020_v39 }
 0x67d   :  { %v3928_v47 = vmul.f32 %v1665_v24, %v3883_v2  ;;  %v1664_v32 = vmul.f32 0.5, %v1656_v19 }
 0x67e   :  { %1697 = vadd.xlane.f32.xlu0 %v3919_v23  ;;  %v3922_v35 = vmul.f32 %v1669_v25, %v1599_v42  ;;  %v1706_v20 = vmul.f32 %v3919_v23, %v3919_v23  ;;  %v1663_v42 = vmul.f32 0.5, %v1655_v16 }
 0x67f   :  { %v3934_v41 = vmul.f32 %v1664_v32, %v3885_v5  ;;  %v1701_v45 = vmul.f32 %v3928_v47, %v3928_v47 }
 0x680   :  { %1695 = vadd.xlane.f32.xlu1 %v3922_v35  ;;  %v1705_v33 = vmul.f32 %v3922_v35, %v3922_v35  ;;  %v3940_v2 = vmul.f32 %v1663_v42, %v3893_v17 }
 0x681   :  { %v1700_v46 = vmul.f32 %v3934_v41, %v3934_v41 }
 0x682   :  { %1715 = vadd.xlane.f32.xlu0 %v1703_v0  ;;  %v1699_v5 = vmul.f32 %v3940_v2, %v3940_v2 }
 0x684   :  { %1687 = vadd.xlane.f32.xlu1 %v3928_v47 }
 0x686   :  { %1721 = vadd.xlane.f32.xlu0 %v1706_v20 }
 0x688   :  { %1685 = vadd.xlane.f32.xlu1 %v3934_v41 }
 0x68a   :  { %1719 = vadd.xlane.f32.xlu0 %v1705_v33 }
 0x68c   :  { %1683 = vadd.xlane.f32.xlu1 %v3940_v2 }
 0x68e   :  { %1713 = vadd.xlane.f32.xlu0 %v1702_v40 }
 0x690   :  { %1707 = vadd.xlane.f32.xlu1 %v1699_v5 }
 0x692   :  { %1711 = vadd.xlane.f32.xlu0 %v1701_v45 }
 0x696   :  { %1709 = vadd.xlane.f32.xlu0 %v1700_v46 }
 0x6f7   :  { %v1690_v17 = vpop.xlane.xlu1 %1689 }
 0x6f8   :  { %v3959_v12 = vmul.f32 0.03125, %v1690_v17 }
 0x6fa   :  { %v1742_v8 = vmul.f32 %v3959_v12, %v3959_v12 }
 0x6ff   :  { %v1694_v44 = vpop.xlane.xlu1 %1693 }
 0x700   :  { %v3951_v30 = vmul.f32 0.03125, %v1694_v44 }
 0x701   :  { %v1718_v14 = vpop.xlane.xlu0 %1717 }
 0x702   :  { %v1744_v58 = vmul.f32 %v3951_v30, %v3951_v30  ;;  %v1736_v50 = vmul.f32 0.03125, %v1718_v14 }
 0x703   :  { %v1692_v54 = vpop.xlane.xlu1 %1691 }
 0x704   :  { %v3955_v18 = vmul.f32 0.03125, %v1692_v54  ;;  %v1752_v56 = vsub.f32 %v1736_v50, %v1744_v58 }
 0x706   :  { %v1743_v59 = vmul.f32 %v3955_v18, %v3955_v18  ;;  %v1768_v3 = vadd.f32 1e-05, %v1752_v56  ;;  %v1760_v56 = vsub.f32 %v3910_v6, %v3951_v30  ;;  %v2265_v6 = vld [vmem:[%s4221_s11 + $0x1] ss:$0 sm:$0xff] }
 0x707   :  { %v1698_v49 = vpop.xlane.xlu0 %1697 }
 0x708   :  { %v1730_v53 = vmul.f32 0.03125, %v1698_v49  ;;  %3021 = vrsqrt.f32 %v1768_v3 }
 0x709   :  { %v1696_v27 = vpop.xlane.xlu1 %1695 }
 0x70a   :  { %v1746_v57 = vmul.f32 %v1730_v53, %v1730_v53  ;;  %v1729_v63 = vmul.f32 0.03125, %v1696_v27  ;;  %v1762_v27 = vsub.f32 %v3919_v23, %v1730_v53 }
 0x70b   :  { %v1716_v52 = vpop.xlane.xlu0 %1715 }
 0x70c   :  { %v1735_v22 = vmul.f32 0.03125, %v1716_v52  ;;  %v1745_v61 = vmul.f32 %v1729_v63, %v1729_v63 }
 0x70d   :  { %v1688_v60 = vpop.xlane.xlu1 %1687 }
 0x70e   :  { %v1751_v1 = vsub.f32 %v1735_v22, %v1743_v59  ;;  %v1725_v24 = vmul.f32 0.03125, %v1688_v60 }
 0x70f   :  { %v1722_v55 = vpop.xlane.xlu0 %1721 }
 0x710   :  { %v1738_v9 = vmul.f32 0.03125, %v1722_v55  ;;  %v1767_v31 = vadd.f32 1e-05, %v1751_v1  ;;  %v1741_v33 = vmul.f32 %v1725_v24, %v1725_v24  ;;  %v2264_v1 = vld [vmem:[%s4220_s10 + $0x1] ss:$0 sm:$0xff] }
 0x711   :  { %v1686_v29 = vpop.xlane.xlu1 %1685 }
 0x712   :  { %v1754_v4 = vsub.f32 %v1738_v9, %v1746_v57  ;;  %v3967_v40 = vmul.f32 0.03125, %v1686_v29  ;;  %v1759_v57 = vsub.f32 %v3916_v51, %v3955_v18  ;;  %v1761_v9 = vsub.f32 %v3922_v35, %v1729_v63 }
 0x713   :  { %v1720_v43 = vpop.xlane.xlu0 %1719  ;;  %v1758_v51 = vsub.f32 %v3907_v21, %v3959_v12 }
 0x714   :  { %v1770_v10 = vadd.f32 1e-05, %v1754_v4  ;;  %v1737_v26 = vmul.f32 0.03125, %v1720_v43  ;;  %v1740_v54 = vmul.f32 %v3967_v40, %v3967_v40 }
 0x715   :  { %v1684_v7 = vpop.xlane.xlu1 %1683  ;;  %v3022_v50 = vpop.eup %3021 }
 0x716   :  { %3023 = vrsqrt.f32 %v1770_v10  ;;  %v1753_v15 = vsub.f32 %v1737_v26, %v1745_v61  ;;  %v3963_v36 = vmul.f32 0.03125, %v1684_v7  ;;  %v1784_v53 = vmul.f32 %v3022_v50, %v1760_v56  ;;  %v2283_v50 = vld [vmem:[%s4222_s12 + $0xc8] sm:$0xff]  ;;  %v2280_v56 = vld [vmem:[%s4222_s12 + $0xb0] sm:$0xff] }
 0x717   :  { %v1714_v25 = vpop.xlane.xlu0 %1713  ;;  %3025 = vrsqrt.f32 %v1767_v31  ;;  %v1757_v26 = vsub.f32 %v3928_v47, %v1725_v24 }
 0x718   :  { %v1769_v19 = vadd.f32 1e-05, %v1753_v15  ;;  %v1734_v39 = vmul.f32 0.03125, %v1714_v25  ;;  %v1739_v16 = vmul.f32 %v3963_v36, %v3963_v36  ;;  %v1798_v43 = vmul.f32 %v2264_v1, %v1784_v53  ;;  %v2080_v53 = vld [vmem:[%s4225_s14 + $0x70] sm:$0xff] }
 0x719   :  { %v1708_v32 = vpop.xlane.xlu1 %1707  ;;  %v1755_v25 = vsub.f32 %v3940_v2, %v3963_v36 }
 0x71a   :  { %3027 = vrsqrt.f32 %v1769_v19  ;;  %v1750_v0 = vsub.f32 %v1734_v39, %v1742_v8  ;;  %v1731_v20 = vmul.f32 0.03125, %v1708_v32  ;;  %v1812_v15 = vadd.f32 %v2265_v6, %v1798_v43  ;;  %v2072_v43 = vld [vmem:[%s4225_s14 + $0x30] sm:$0xff] }
 0x71b   :  { %v1712_v42 = vpop.xlane.xlu0 %1711  ;;  %v1756_v19 = vsub.f32 %v3934_v41, %v3967_v40  ;;  %v2289_v41 = vld [vmem:[%s4222_s12 + $0xf8] sm:$0xff]  ;;  %v3054_v40 = vld [vmem:[%s4219_s1 + $0x8] sm:$0xff] }
 0x71c   :  { %v1766_v5 = vadd.f32 1e-05, %v1750_v0  ;;  %v1733_v45 = vmul.f32 0.03125, %v1712_v42  ;;  %v1747_v46 = vsub.f32 %v1731_v20, %v1739_v16 }
 0x71e   :  { %3029 = vrsqrt.f32 %v1766_v5  ;;  %v1749_v17 = vsub.f32 %v1733_v45, %v1741_v33  ;;  %v1763_v44 = vadd.f32 1e-05, %v1747_v46  ;;  %v2288_v33 = vld [vmem:[%s4222_s12 + $0xf0] sm:$0xff]  ;;  %v2287_v45 = vld [vmem:[%s4222_s12 + $0xe8] sm:$0xff]  ;;  %v2286_v46 = vld [vmem:[%s4222_s12 + $0xe0] sm:$0xff] }
 0x71f   :  { %v1710_v14 = vpop.xlane.xlu0 %1709  ;;  %v3055_v5 = vld [vmem:[%s4219_s1 + $0x10] sm:$0xff] }
 0x720   :  { %v1765_v49 = vadd.f32 1e-05, %v1749_v17  ;;  %v1732_v58 = vmul.f32 0.03125, %v1710_v14  ;;  %3031 = vrsqrt.f32 %v1763_v44  ;;  %v3056_v17 = vld [vmem:[%s4219_s1 + $0x18] sm:$0xff]  ;;  %v3057_v44 = vld [vmem:[%s4219_s1 + $0x20] sm:$0xff] }
 0x721   :  { %v2285_v14 = vld [vmem:[%s4222_s12 + $0xd8] sm:$0xff] }
 0x722   :  { %3033 = vrsqrt.f32 %v1765_v49  ;;  %v1748_v52 = vsub.f32 %v1732_v58, %v1740_v54  ;;  %v2284_v54 = vld [vmem:[%s4222_s12 + $0xd0] sm:$0xff]  ;;  %v3058_v49 = vld [vmem:[%s4219_s1 + $0x28] sm:$0xff] }
 0x723   :  { %v3024_v22 = vpop.eup %3023  ;;  %v3059_v58 = vld [vmem:[%s4219_s1 + $0x30] sm:$0xff] }
 0x724   :  { %v1764_v59 = vadd.f32 1e-05, %v1748_v52  ;;  %v1786_v60 = vmul.f32 %v3024_v22, %v1762_v27  ;;  %v3026_v55 = vpop.eup %3025  ;;  %v2282_v27 = vld [vmem:[%s4222_s12 + $0xc0] sm:$0xff]  ;;  %v3060_v52 = vld [vmem:[%s4219_s1 + $0x38] sm:$0xff] }
 0x725   :  { %v1783_v29 = vmul.f32 %v3026_v55, %v1759_v57  ;;  %v2281_v22 = vld [vmem:[%s4222_s12 + $0xb8] sm:$0xff]  ;;  %v2276_v57 = vld [vmem:[%s4222_s12 + $0x90] sm:$0xff] }
 0x726   :  { %3035 = vrsqrt.f32 %v1764_v59  ;;  %v1800_v23 = vmul.f32 %v2264_v1, %v1786_v60  ;;  %v2279_v59 = vld [vmem:[%s4222_s12 + $0xa8] sm:$0xff]  ;;  %v2278_v60 = vld [vmem:[%s4222_s12 + $0xa0] sm:$0xff]  ;;  %v2277_v55 = vld [vmem:[%s4222_s12 + $0x98] sm:$0xff] }
 0x727   :  { %v3028_v3 = vpop.eup %3027  ;;  %v1797_v63 = vmul.f32 %v2264_v1, %v1783_v29  ;;  %v2075_v29 = vld [vmem:[%s4225_s14 + $0x48] sm:$0xff] }
 0x728   :  { %v1814_v30 = vadd.f32 %v2265_v6, %v1800_v23  ;;  %v1785_v4 = vmul.f32 %v3028_v3, %v1761_v9  ;;  %v2274_v9 = vld [vmem:[%s4222_s12 + $0x80] sm:$0xff]  ;;  %v2081_v23 = vld [vmem:[%s4225_s14 + $0x78] sm:$0xff]  ;;  %v2079_v3 = vld [vmem:[%s4225_s14 + $0x68] sm:$0xff] }
 0x729   :  { %v1811_v21 = vadd.f32 %v2265_v6, %v1797_v63  ;;  %2881 = vmatprep.subr.mxu1 %v2081_v23  ;;  %v2755_v63 = vpop.f32.mrf.mxu0 }
 0x72a   :  { %2809 = vmatprep.subr.mxu0 %v1814_v30  ;;  %v1799_v18 = vmul.f32 %v2264_v1, %v1785_v4  ;;  %2882 = vmatpush3.msra.mxu1 %v2081_v23  ;;  %v2076_v4 = vld [vmem:[%s4225_s14 + $0x50] sm:$0xff] }
 0x72b   :  { %v3030_v61 = vpop.eup %3029  ;;  %2810 = vmatpush3.msra.mxu0 %v1814_v30  ;;  %2883 = vmatprep.subr.mxu1 %v2080_v53  ;;  %v2077_v30 = vld [vmem:[%s4225_s14 + $0x58] sm:$0xff] }
 0x72c   :  { %v1813_v35 = vadd.f32 %v2265_v6, %v1799_v18  ;;  %v1782_v31 = vmul.f32 %v3030_v61, %v1758_v51  ;;  %2884 = vmatpush3.msra.mxu1 %v2080_v53  ;;  %v2074_v51 = vld [vmem:[%s4225_s14 + $0x40] sm:$0xff]  ;;  %v2073_v18 = vld [vmem:[%s4225_s14 + $0x38] sm:$0xff]  ;;  %v2071_v61 = vld [vmem:[%s4225_s14 + $0x28] sm:$0xff] }
 0x72d   :  { %v3032_v10 = vpop.eup %3031  ;;  %2885 = vmatprep.subr.mxu1 %v2079_v3 }
 0x72e   :  { %2811 = vmatprep.subr.mxu0 %v1813_v35  ;;  %v1796_v7 = vmul.f32 %v2264_v1, %v1782_v31  ;;  %v1779_v32 = vmul.f32 %v3032_v10, %v1755_v25  ;;  %2886 = vmatpush3.msra.mxu1 %v2079_v3  ;;  %v1366_v31 = vpop.f32.mrf.mxu0 }
 0x72f   :  { %v3034_v8 = vpop.eup %3033  ;;  %2812 = vmatpush3.msra.mxu0 %v1813_v35  ;;  %v2070_v35 = vld [vmem:[%s4225_s14 + $0x20] sm:$0xff] }
 0x730   :  { %2813 = vmatprep.subr.mxu0 %v1812_v15  ;;  %v1781_v12 = vmul.f32 %v3034_v8, %v1757_v26  ;;  %v1810_v39 = vadd.f32 %v2265_v6, %v1796_v7  ;;  %v1793_v2 = vmul.f32 %v2264_v1, %v1779_v32  ;;  %v2758_v10 = vpop.f32.mrf.mxu0 }
 0x731   :  { %2814 = vmatpush3.msra.mxu0 %v1812_v15  ;;  %v2243_v15 = vld [vmem:[%s4223_s7 + $0x1] ss:$0 sm:$0xff] }
 0x732   :  { %2815 = vmatprep.subr.mxu0 %v1811_v21  ;;  %v1795_v0 = vmul.f32 %v2264_v1, %v1781_v12  ;;  %v1807_v42 = vadd.f32 %v2265_v6, %v1793_v2  ;;  %v1376_v26 = vpop.f32.mrf.mxu0  ;;  %v4105_v8 = vadd.f32 %v2243_v15, %v1366_v31  ;;  %v4107_v25 = vadd.f32 %v2755_v63, %v2243_v15 }
 0x733   :  { %v3036_v47 = vpop.eup %3035  ;;  %2816 = vmatpush3.msra.mxu0 %v1811_v21 }
 0x734   :  { %2817 = vmatprep.subr.mxu0 %v1810_v39  ;;  %v1809_v24 = vadd.f32 %v2265_v6, %v1795_v0  ;;  %v1780_v16 = vmul.f32 %v3036_v47, %v1756_v19  ;;  %v2761_v7 = vpop.f32.mrf.mxu0  ;;  %v1405_v12 = vmul.f32 %v4105_v8, %v4105_v8  ;;  %v4111_v19 = vadd.f32 %v2243_v15, %v1376_v26 }
 0x735   :  { %2818 = vmatpush3.msra.mxu0 %v1810_v39  ;;  %v1406_v39 = vmul.f32 %v4107_v25, %v4107_v25  ;;  %v4115_v0 = vadd.f32 %v2758_v10, %v2243_v15 }
 0x736   :  { %2819 = vmatprep.subr.mxu0 %v1809_v24  ;;  %v1794_v20 = vmul.f32 %v2264_v1, %v1780_v16  ;;  %v2275_v1 = vld [vmem:[%s4222_s12 + $0x88] sm:$0xff]  ;;  %v1386_v21 = vpop.f32.mrf.mxu0  ;;  %v1413_v47 = vmul.f32 %v1405_v12, %v4105_v8 }
 0x737   :  { %2820 = vmatpush3.msra.mxu0 %v1809_v24  ;;  %v1407_v24 = vmul.f32 %v4111_v19, %v4111_v19  ;;  %v4120_v16 = vadd.f32 %v2243_v15, %v1386_v21  ;;  %v1408_v2 = vmul.f32 %v4115_v0, %v4115_v0 }
 0x738   :  { %v1808_v36 = vadd.f32 %v2265_v6, %v1794_v20  ;;  %v2078_v6 = vld [vmem:[%s4225_s14 + $0x60] sm:$0xff]  ;;  %v2764_v32 = vpop.f32.mrf.mxu0  ;;  %v1414_v20 = vmul.f32 %v1406_v39, %v4107_v25 }
 0x739   :  { %2887 = vmatprep.subr.mxu1 %v2078_v6 }
 0x73a   :  { %2821 = vmatprep.subr.mxu0 %v1808_v36  ;;  %2888 = vmatpush3.msra.mxu1 %v2078_v6 }
 0x73b   :  { %2822 = vmatpush3.msra.mxu0 %v1808_v36  ;;  %2889 = vmatprep.subr.mxu1 %v2077_v30  ;;  %v4125_v36 = vadd.f32 %v2761_v7, %v2243_v15 }
 0x73c   :  { %2823 = vmatprep.subr.mxu0 %v1807_v42  ;;  %2890 = vmatpush3.msra.mxu1 %v2077_v30 }
 0x73d   :  { %2824 = vmatpush3.msra.mxu0 %v1807_v42  ;;  %2891 = vmatprep.subr.mxu1 %v2076_v4  ;;  %v1396_v42 = vpop.f32.mrf.mxu0 }
 0x73e   :  { %2826 = vmatmul.mubr.msk.f32.vlgmr.msra.gmra.mxu0 %vm865_vm0, %v3054_v40  ;;  %2837 = vmatprep.subr.mxu0 %v2289_v41  ;;  %v1409_v40 = vmul.f32 %v4120_v16, %v4120_v16 }
 0x73f   :  { %2828 = vmatprep.mubr.msk.f32.mxu0 %vm865_vm0, %v3055_v5  ;;  %2838 = vmatpush3.msra.mxu0 %v2289_v41  ;;  %v1421_v41 = vmul.f32 0.044715, %v1413_v47  ;;  %v4130_v5 = vadd.f32 %v2243_v15, %v1396_v42 }
 0x740   :  { %2839 = vmatprep.subr.mxu0 %v2288_v33  ;;  %2892 = vmatpush3.msra.mxu1 %v2076_v4 }
 0x741   :  { %2840 = vmatpush3.msra.mxu0 %v2288_v33  ;;  %2893 = vmatprep.subr.mxu1 %v2075_v29  ;;  %v1415_v33 = vmul.f32 %v1407_v24, %v4111_v19 }
 0x742   :  { %2829 = vmatmul.mubr.msk.f32.gmra.mxu0 %vm865_vm0, %v3056_v17  ;;  %2841 = vmatprep.subr.mxu0 %v2287_v45  ;;  %v1410_v17 = vmul.f32 %v4125_v36, %v4125_v36 }
 0x743   :  { %2831 = vmatprep.mubr.msk.f32.mxu0 %vm865_vm0, %v3057_v44  ;;  %2842 = vmatpush3.msra.mxu0 %v2287_v45  ;;  %v1422_v45 = vmul.f32 0.044715, %v1414_v20  ;;  %v4135_v44 = vadd.f32 %v2764_v32, %v2243_v15 }
 0x744   :  { %2843 = vmatprep.subr.mxu0 %v2286_v46  ;;  %2894 = vmatpush3.msra.mxu1 %v2075_v29 }
 0x745   :  { %2844 = vmatpush3.msra.mxu0 %v2286_v46  ;;  %2895 = vmatprep.subr.mxu1 %v2074_v51  ;;  %v1416_v46 = vmul.f32 %v1408_v2, %v4115_v0 }
 0x746   :  { %2832 = vmatmul.mubr.msk.f32.gmra.mxu0 %vm865_vm0, %v3058_v49  ;;  %2845 = vmatprep.subr.mxu0 %v2285_v14  ;;  %v1417_v49 = vmul.f32 %v1409_v40, %v4120_v16 }
 0x747   :  { %2834 = vmatprep.mubr.msk.f32.mxu0 %vm865_vm0, %v3059_v58  ;;  %2846 = vmatpush3.msra.mxu0 %v2285_v14  ;;  %v1429_v14 = vadd.f32 %v1421_v41, %v4105_v8  ;;  %v1411_v58 = vmul.f32 %v4130_v5, %v4130_v5 }
 0x748   :  { %2847 = vmatprep.subr.mxu0 %v2284_v54  ;;  %2896 = vmatpush3.msra.mxu1 %v2074_v51 }
 0x749   :  { %2848 = vmatpush3.msra.mxu0 %v2284_v54  ;;  %2897 = vmatprep.subr.mxu1 %v2073_v18  ;;  %v1423_v54 = vmul.f32 0.044715, %v1415_v33 }
 0x74a   :  { %2835 = vmatmul.mubr.msk.f32.gmra.mxu0 %vm865_vm0, %v3060_v52  ;;  %2849 = vmatprep.subr.mxu0 %v2283_v50  ;;  %v1418_v52 = vmul.f32 %v1410_v17, %v4125_v36 }
 0x74b   :  { %2850 = vmatpush3.msra.mxu0 %v2283_v50  ;;  %2898 = vmatpush3.msra.mxu1 %v2073_v18  ;;  %v1430_v50 = vadd.f32 %v1422_v45, %v4107_v25 }
 0x74c   :  { %2851 = vmatprep.subr.mxu0 %v2282_v27  ;;  %2899 = vmatprep.subr.mxu1 %v2072_v43 }
 0x74d   :  { %2852 = vmatpush3.msra.mxu0 %v2282_v27  ;;  %2900 = vmatpush3.msra.mxu1 %v2072_v43  ;;  %v1424_v27 = vmul.f32 0.044715, %v1416_v46  ;;  %v1438_v23 = vmul.f32 0.7978846, %v1430_v50 }
 0x74e   :  { %2853 = vmatprep.subr.mxu0 %v2281_v22  ;;  %2901 = vmatprep.subr.mxu1 %v2071_v61 }
 0x74f   :  { %2854 = vmatpush3.msra.mxu0 %v2281_v22  ;;  %2902 = vmatpush3.msra.mxu1 %v2071_v61  ;;  %v1412_v22 = vmul.f32 %v4135_v44, %v4135_v44 }
 0x750   :  { %2855 = vmatprep.subr.mxu0 %v2280_v56  ;;  %2903 = vmatprep.subr.mxu1 %v2070_v35 }
 0x751   :  { %2856 = vmatpush3.msra.mxu0 %v2280_v56  ;;  %2904 = vmatpush3.msra.mxu1 %v2070_v35  ;;  %v1431_v56 = vadd.f32 %v1423_v54, %v4111_v19 }
 0x752   :  { %2857 = vmatprep.subr.mxu0 %v2279_v59 }
 0x753   :  { %2858 = vmatpush3.msra.mxu0 %v2279_v59  ;;  %v1425_v59 = vmul.f32 0.044715, %v1417_v49  ;;  %v1439_v6 = vmul.f32 0.7978846, %v1431_v56 }
 0x754   :  { %2859 = vmatprep.subr.mxu0 %v2278_v60 }
 0x755   :  { %2860 = vmatpush3.msra.mxu0 %v2278_v60  ;;  %v1419_v60 = vmul.f32 %v1411_v58, %v4130_v5  ;;  %v1433_v53 = vadd.f32 %v1425_v59, %v4120_v16 }
 0x756   :  { %2861 = vmatprep.subr.mxu0 %v2277_v55 }
 0x757   :  { %2862 = vmatpush3.msra.mxu0 %v2277_v55  ;;  %v1437_v55 = vmul.f32 0.7978846, %v1429_v14  ;;  %v1427_v3 = vmul.f32 0.044715, %v1419_v60  ;;  %v1441_v18 = vmul.f32 0.7978846, %v1433_v53 }
 0x758   :  { %2863 = vmatprep.subr.mxu0 %v2276_v57 }
 0x759   :  { %2864 = vmatpush3.msra.mxu0 %v2276_v57  ;;  %v1432_v57 = vadd.f32 %v1424_v27, %v4115_v0  ;;  %3037 = vtanh.f32 %v1437_v55  ;;  %v1435_v51 = vadd.f32 %v1427_v3, %v4130_v5 }
 0x75a   :  { %2865 = vmatprep.subr.mxu0 %v2275_v1  ;;  %3039 = vtanh.f32 %v1438_v23 }
 0x75b   :  { %2866 = vmatpush3.msra.mxu0 %v2275_v1  ;;  %v1426_v1 = vmul.f32 0.044715, %v1418_v52  ;;  %v1440_v29 = vmul.f32 0.7978846, %v1432_v57  ;;  %3041 = vtanh.f32 %v1439_v6  ;;  %v1443_v35 = vmul.f32 0.7978846, %v1435_v51 }
 0x75c   :  { %2867 = vmatprep.subr.mxu0 %v2274_v9 }
 0x75d   :  { %2868 = vmatpush3.msra.mxu0 %v2274_v9  ;;  %v1420_v9 = vmul.f32 %v1412_v22, %v4135_v44  ;;  %v1434_v30 = vadd.f32 %v1426_v1, %v4125_v36  ;;  %3043 = vtanh.f32 %v1440_v29 }
 0x75e   :  { %3045 = vtanh.f32 %v1441_v18 }
 0x75f   :  { %v1428_v4 = vmul.f32 0.044715, %v1420_v9  ;;  %v1442_v61 = vmul.f32 0.7978846, %v1434_v30 }
 0x761   :  { %v1436_v43 = vadd.f32 %v1428_v4, %v4135_v44  ;;  %3047 = vtanh.f32 %v1442_v61 }
 0x762   :  { %3049 = vtanh.f32 %v1443_v35 }
 0x763   :  { %v1444_v63 = vmul.f32 0.7978846, %v1436_v43  ;;  %v2291_v43 = vld [vmem:[%s4224_s13 + $0x1] ss:$0 sm:$0xff] }
 0x765   :  { %3051 = vtanh.f32 %v1444_v63 }
 0x766   :  { %v3038_v31 = vpop.eup %3037 }
 0x767   :  { %v3040_v10 = vpop.eup %3039  ;;  %v1453_v26 = vadd.f32 1.0, %v3038_v31 }
 0x768   :  { %v3042_v15 = vpop.eup %3041  ;;  %v1454_v7 = vadd.f32 1.0, %v3040_v10 }
 0x769   :  { %v1461_v12 = vmul.f32 0.5, %v1453_v26  ;;  %v1455_v39 = vadd.f32 1.0, %v3042_v15 }
 0x76a   :  { %v3044_v21 = vpop.eup %3043  ;;  %v1462_v47 = vmul.f32 0.5, %v1454_v7 }
 0x76b   :  { %v3046_v32 = vpop.eup %3045  ;;  %v1456_v24 = vadd.f32 1.0, %v3044_v21  ;;  %v1469_v42 = vmul.f32 %v1461_v12, %v4105_v8  ;;  %v1463_v41 = vmul.f32 0.5, %v1455_v39 }
 0x76c   :  { %v1457_v33 = vadd.f32 1.0, %v3046_v32  ;;  %v1470_v45 = vmul.f32 %v1462_v47, %v4107_v25 }
 0x76d   :  { %v1464_v17 = vmul.f32 0.5, %v1456_v24  ;;  %v1471_v27 = vmul.f32 %v1463_v41, %v4111_v19 }
 0x76e   :  { %v3048_v20 = vpop.eup %3047  ;;  %v1465_v52 = vmul.f32 0.5, %v1457_v33 }
 0x76f   :  { %v3050_v40 = vpop.eup %3049  ;;  %v1458_v14 = vadd.f32 1.0, %v3048_v20  ;;  %v1472_v56 = vmul.f32 %v1464_v17, %v4115_v0 }
 0x770   :  { %v1459_v22 = vadd.f32 1.0, %v3050_v40  ;;  %v1473_v1 = vmul.f32 %v1465_v52, %v4120_v16  ;;  %v2069_v16 = vld [vmem:[%s4225_s14 + $0x18] sm:$0xff] }
 0x771   :  { %v1466_v59 = vmul.f32 0.5, %v1458_v14  ;;  %2905 = vmatprep.subr.mxu1 %v2069_v16 }
 0x772   :  { %v3052_v54 = vpop.eup %3051  ;;  %v1467_v9 = vmul.f32 0.5, %v1459_v22  ;;  %2906 = vmatpush3.msra.mxu1 %v2069_v16 }
 0x773   :  { %v1460_v60 = vadd.f32 1.0, %v3052_v54  ;;  %v1474_v23 = vmul.f32 %v1466_v59, %v4125_v36  ;;  %v2068_v36 = vld [vmem:[%s4225_s14 + $0x10] sm:$0xff] }
 0x774   :  { %v1475_v0 = vmul.f32 %v1467_v9, %v4130_v5  ;;  %2907 = vmatprep.subr.mxu1 %v2068_v36  ;;  %v2067_v5 = vld [vmem:[%s4225_s14 + $0x8] sm:$0xff] }
 0x775   :  { %v1468_v19 = vmul.f32 0.5, %v1460_v60  ;;  %2908 = vmatpush3.msra.mxu1 %v2068_v36 }
 0x776   :  { %2909 = vmatprep.subr.mxu1 %v2067_v5 }
 0x777   :  { %v1476_v4 = vmul.f32 %v1468_v19, %v4135_v44  ;;  %2910 = vmatpush3.msra.mxu1 %v2067_v5  ;;  %v2066_v44 = vld [vmem:[%s4225_s14] sm:$0xff] }
 0x778   :  { %2911 = vmatprep.subr.mxu1 %v2066_v44 }
 0x779   :  { %2912 = vmatpush3.msra.mxu1 %v2066_v44 }
 0x7fe   :  { %v2827_v2 = vpop.f32.mrf.mxu0 }
 0x7ff   :  { %v1921_v58 = vmul.f32 %v2827_v2, %v1470_v45 }
 0x800   :  { %v1881_v46 = vpop.f32.mrf.mxu0 }
 0x801   :  { %v1920_v49 = vmul.f32 %v1881_v46, %v1469_v42 }
 0x802   :  { %v2830_v50 = vpop.f32.mrf.mxu0 }
 0x803   :  { %2869 = vmatprep.mubr.f32.mxu0 %v1920_v49  ;;  %v1923_v25 = vmul.f32 %v2830_v50, %v1472_v56 }
 0x804   :  { %v1891_v8 = vpop.f32.mrf.mxu0  ;;  %2870 = vmatmul.mubr.f32.vlgmr.msra.gmra.mxu0 %v1921_v58 }
 0x805   :  { %v1922_v55 = vmul.f32 %v1891_v8, %v1471_v27 }
 0x806   :  { %v2833_v57 = vpop.f32.mrf.mxu0 }
 0x807   :  { %2872 = vmatprep.mubr.f32.mxu0 %v1922_v55  ;;  %v1925_v6 = vmul.f32 %v2833_v57, %v1474_v23 }
 0x808   :  { %v1901_v53 = vpop.f32.mrf.mxu0  ;;  %2873 = vmatmul.mubr.f32.gmra.mxu0 %v1923_v25 }
 0x809   :  { %v1924_v3 = vmul.f32 %v1901_v53, %v1473_v1 }
 0x80a   :  { %v2836_v30 = vpop.f32.mrf.mxu0 }
 0x80b   :  { %2875 = vmatprep.mubr.f32.mxu0 %v1924_v3  ;;  %v1927_v18 = vmul.f32 %v2836_v30, %v1476_v4 }
 0x80c   :  { %v1911_v29 = vpop.f32.mrf.mxu0  ;;  %2876 = vmatmul.mubr.f32.gmra.mxu0 %v1925_v6 }
 0x80d   :  { %v1926_v51 = vmul.f32 %v1911_v29, %v1475_v0 }
 0x80f   :  { %2878 = vmatprep.mubr.f32.mxu0 %v1926_v51 }
 0x810   :  { %2879 = vmatmul.mubr.f32.gmra.mxu0 %v1927_v18 }
 0x8c4   :  { %v2871_v61 = vpop.f32.mrf.mxu0 }
 0x8c5   :  { %v2025_v35 = vadd.f32 %v2871_v61, %v2291_v43 }
 0x8c6   :  { %v2019_v63 = vpop.f32.mrf.mxu0 }
 0x8c7   :  { %v2020_v31 = vadd.f32 %v2291_v43, %v2019_v63  ;;  %v2059_v15 = vadd.f32 %v2025_v35, %v3679_v13 }
 0x8c8   :  { %v2874_v10 = vpop.f32.mrf.mxu0 }
 0x8c9   :  { %v2058_v26 = vadd.f32 %v2020_v31, %v3682_v38  ;;  %v2035_v7 = vadd.f32 %v2874_v10, %v2291_v43 }
 0x8ca   :  { %v2029_v21 = vpop.f32.mrf.mxu0 }
 0x8cb   :  { %v2030_v12 = vadd.f32 %v2291_v43, %v2029_v21  ;;  %2913 = vmatprep.mubr.f32.mxu1 %v2058_v26  ;;  %v2061_v47 = vadd.f32 %v2035_v7, %v3691_v62  ;;  %v2292_v62 = vld [vmem:[%s4226_s15] ss:$0 sm:$0xff] }
 0x8cc   :  { %v2877_v39 = vpop.f32.mrf.mxu0  ;;  %2914 = vmatmul.mubr.f32.vlgmr.msra.gmra.mxu1 %v2059_v15 }
 0x8cd   :  { %v2060_v32 = vadd.f32 %v2030_v12, %v3694_v28  ;;  %v2045_v24 = vadd.f32 %v2877_v39, %v2291_v43 }
 0x8ce   :  { %v2039_v20 = vpop.f32.mrf.mxu0 }
 0x8cf   :  { %v2040_v2 = vadd.f32 %v2291_v43, %v2039_v20  ;;  %2916 = vmatprep.mubr.f32.mxu1 %v2060_v32  ;;  %v2063_v13 = vadd.f32 %v2045_v24, %v3709_v37 }
 0x8d0   :  { %v2880_v42 = vpop.f32.mrf.mxu0  ;;  %2917 = vmatmul.mubr.f32.gmra.mxu1 %v2061_v47 }
 0x8d1   :  { %v2062_v38 = vadd.f32 %v2040_v2, %v3718_v34  ;;  %v2055_v41 = vadd.f32 %v2880_v42, %v2291_v43 }
 0x8d2   :  { %v2049_v33 = vpop.f32.mrf.mxu0 }
 0x8d3   :  { %v2050_v40 = vadd.f32 %v2291_v43, %v2049_v33  ;;  %2919 = vmatprep.mubr.f32.mxu1 %v2062_v38  ;;  %v2065_v28 = vadd.f32 %v2055_v41, %v3733_v11 }
 0x8d4   :  { %2920 = vmatmul.mubr.f32.gmra.mxu1 %v2063_v13 }
 0x8d5   :  { %v2064_v45 = vadd.f32 %v2050_v40, %v3745_v48 }
 0x8d7   :  { %2922 = vmatprep.mubr.f32.mxu1 %v2064_v45 }
 0x8d8   :  { %2923 = vmatmul.mubr.f32.gmra.mxu1 %v2065_v28 }
 0x98c   :  { %v2915_v46 = vpop.f32.mrf.mxu1 }
 0x98d   :  { %v2161_v17 = vadd.f32 %v2915_v46, %v2292_v62 }
 0x98e   :  { %v2155_v34 = vpop.f32.mrf.mxu1 }
 0x98f   :  { %2195 = vst [vmem:[%s4227_s16 + $0x8] sm:$0xff] %v2161_v17  ;;  %v2156_v37 = vadd.f32 %v2292_v62, %v2155_v34 }
 0x990   :  { %v2918_v14 = vpop.f32.mrf.mxu1 }
 0x991   :  { %2194 = vst [vmem:[%s4227_s16] sm:$0xff] %v2156_v37  ;;  %v2171_v11 = vadd.f32 %v2918_v14, %v2292_v62 }
 0x992   :  { %v2165_v48 = vpop.f32.mrf.mxu1 }
 0x993   :  { %2197 = vst [vmem:[%s4227_s16 + $0x18] sm:$0xff] %v2171_v11  ;;  %v2166_v54 = vadd.f32 %v2292_v62, %v2165_v48 }
 0x994   :  { %v2921_v49 = vpop.f32.mrf.mxu1 }
 0x995   :  { %2196 = vst [vmem:[%s4227_s16 + $0x10] sm:$0xff] %v2166_v54  ;;  %v2181_v58 = vadd.f32 %v2921_v49, %v2292_v62 }
 0x996   :  { %v2175_v50 = vpop.f32.mrf.mxu1 }
 0x997   :  { %2199 = vst [vmem:[%s4227_s16 + $0x28] sm:$0xff] %v2181_v58  ;;  %v2176_v27 = vadd.f32 %v2292_v62, %v2175_v50 }
 0x998   :  { %v2924_v52 = vpop.f32.mrf.mxu1 }
 0x999   :  { %2198 = vst [vmem:[%s4227_s16 + $0x20] sm:$0xff] %v2176_v27  ;;  %v2191_v22 = vadd.f32 %v2924_v52, %v2292_v62 }
 0x99a   :  { %v2185_v56 = vpop.f32.mrf.mxu1 }
 0x99b   :  { %2201 = vst [vmem:[%s4227_s16 + $0x38] sm:$0xff] %v2191_v22  ;;  %v2186_v8 = vadd.f32 %v2292_v62, %v2185_v56 }
 0x99d   :  { %2200 = vst [vmem:[%s4227_s16 + $0x30] sm:$0xff] %v2186_v8 }

</bundles_post_ra>
